<compile_context>
chip_gen: v7x
topology: tpu7x:2x2x1
jax: 0.10.0
libtpu: 0.0.40
codegen_flags: <defaults>
</compile_context>

<pallas_src>
import functools

import jax
import jax.numpy as jnp
from jax import lax
from jax.experimental import pallas as pl
from jax.experimental.pallas import tpu as pltpu


# ----------------------------------------------------------------------------
# Shape helpers
# ----------------------------------------------------------------------------
def _round_up(x, m):
    return ((x + m - 1) // m) * m


def conv2d_size_out(size, kernel_size, stride):
    return (size - (kernel_size - 1) - 1) // stride + 1


def _pick_m_tile(M, max_tm=512, align=16):
    """Row-tile size (sublane aligned for bf16 output) and padded M."""
    tm = min(max_tm, _round_up(M, align))
    return tm, _round_up(M, tm)


def _pick_k_tile(K_pad, max_tk=2048):
    """Largest 128-multiple <= max_tk dividing K_pad (K_pad is a 128-multiple)."""
    tk = min(max_tk, K_pad)
    while K_pad % tk:
        tk -= 128
    return tk


# ----------------------------------------------------------------------------
# Pallas kernel 1: out = relu(A @ W + b) — every conv layer as im2col matmul.
# A/W bf16, f32 accumulation + bias + ReLU, bf16 lane-dense output.
# ----------------------------------------------------------------------------
def _mm_bias_relu_kernel(a_ref, w_ref, b_ref, o_ref):
    acc = jnp.dot(a_ref[...], w_ref[...], preferred_element_type=jnp.float32)
    acc = jnp.maximum(acc + b_ref[...], 0.0)        # (1, Np) bias broadcasts
    o_ref[...] = acc.astype(o_ref.dtype)


def matmul_bias_relu(a_bf16, w_pad, b_pad):
    """a: (M, Kp) bf16, w_pad: (Kp, Np) bf16, b_pad: (1, Np) f32 -> (M, Np) bf16."""
    M, Kp = a_bf16.shape
    Kp2, Np = w_pad.shape
    assert Kp == Kp2, (Kp, Kp2)

    tm, Mp = _pick_m_tile(M)
    if Mp != M:
        a_bf16 = jnp.pad(a_bf16, ((0, Mp - M), (0, 0)))

    out = pl.pallas_call(
        _mm_bias_relu_kernel,
        out_shape=jax.ShapeDtypeStruct((Mp, Np), jnp.bfloat16),
        grid=(Mp // tm,),
        in_specs=[
            pl.BlockSpec((tm, Kp), lambda i: (i, 0)),   # activations, M-tiled
            pl.BlockSpec((Kp, Np), lambda i: (0, 0)),   # weight resident
            pl.BlockSpec((1, Np), lambda i: (0, 0)),    # bias resident
        ],
        out_specs=pl.BlockSpec((tm, Np), lambda i: (i, 0)),
        compiler_params=pltpu.CompilerParams(
            dimension_semantics=("parallel",),          # shard M tiles over TCs
            vmem_limit_bytes=32 * 1024 * 1024,
        ),
    )(a_bf16, w_pad, b_pad)
    return out[:M]


# ----------------------------------------------------------------------------
# Pallas kernel 2: fused fc1+fc2:  out = relu(x @ W1 + b1) @ W2 + b2
# fc1 reduction axis K1 tiled over the grid with a f32 VMEM accumulator.
# ----------------------------------------------------------------------------
def _fused_fc_kernel(a_ref, w1_ref, b1_ref, w2_ref, b2_ref, o_ref, acc_ref):
    k = pl.program_id(0)

    @pl.when(k == 0)
    def _():
        acc_ref[...] = jnp.zeros_like(acc_ref)

    acc_ref[...] += jnp.dot(a_ref[...], w1_ref[...],
                            preferred_element_type=jnp.float32)

    @pl.when(k == pl.num_programs(0) - 1)
    def _():
        h = jnp.maximum(acc_ref[...] + b1_ref[...], 0.0)
        out = jnp.dot(h.astype(jnp.bfloat16), w2_ref[...],
                      preferred_element_type=jnp.float32) + b2_ref[...]
        o_ref[...] = out.astype(o_ref.dtype)


def fused_fc(a_bf16, w1_pad, b1_pad, w2_pad, b2_pad):
    """a: (M, K1p) bf16 ; w1: (K1p, N1p) bf16 ; w2: (N1p, N2p) bf16 -> (M, N2p) f32."""
    M, K1p = a_bf16.shape
    K1p2, N1p = w1_pad.shape
    N1p2, N2p = w2_pad.shape
    assert K1p == K1p2 and N1p == N1p2

    Mp = _round_up(M, 16)
    if Mp != M:
        a_bf16 = jnp.pad(a_bf16, ((0, Mp - M), (0, 0)))
    tk = _pick_k_tile(K1p, 2048)                    # fat W1 stream blocks

    out = pl.pallas_call(
        _fused_fc_kernel,
        out_shape=jax.ShapeDtypeStruct((Mp, N2p), jnp.float32),
        grid=(K1p // tk,),
        in_specs=[
            pl.BlockSpec((Mp, tk), lambda k: (0, k)),     # activations, K-tiled
            pl.BlockSpec((tk, N1p), lambda k: (k, 0)),    # W1, streamed over K
            pl.BlockSpec((1, N1p), lambda k: (0, 0)),     # b1 resident
            pl.BlockSpec((N1p, N2p), lambda k: (0, 0)),   # W2 resident
            pl.BlockSpec((1, N2p), lambda k: (0, 0)),     # b2 resident
        ],
        out_specs=pl.BlockSpec((Mp, N2p), lambda k: (0, 0)),
        scratch_shapes=[pltpu.VMEM((Mp, N1p), jnp.float32)],
        compiler_params=pltpu.CompilerParams(
            dimension_semantics=("arbitrary",),           # reduction axis
            vmem_limit_bytes=32 * 1024 * 1024,
        ),
    )(a_bf16, w1_pad, b1_pad, w2_pad, b2_pad)
    return out[:M]


# ----------------------------------------------------------------------------
# Glue: im2col via one XLA-fused op. Patch features are ordered (cin, kh, kw).
# ----------------------------------------------------------------------------
def _extract_patches(x, KH, KW, stride, data_format):
    patches = lax.conv_general_dilated_patches(
        x,
        filter_shape=(KH, KW),
        window_strides=(stride, stride),
        padding="VALID",
        dimension_numbers=(data_format, "OIHW", "NHWC"),
    )
    B, Ho, Wo, F = patches.shape
    return patches.reshape(B * Ho * Wo, F), (B, Ho, Wo)


def conv2d_relu(x, w_pad, b_pad, kh, kw, stride, n_out, *, data_format):
    a, (B, Ho, Wo) = _extract_patches(x, kh, kw, stride, data_format)
    K = a.shape[1]
    Kp = w_pad.shape[0]
    if Kp != K:
        a = jnp.pad(a, ((0, 0), (0, Kp - K)))
    a = a.astype(jnp.bfloat16)                      # no-op after conv1
    out = matmul_bias_relu(a, w_pad, b_pad)          # Pallas hot path
    return out[:, :n_out].reshape(B, Ho, Wo, n_out)


# ----------------------------------------------------------------------------
# Parameters (PyTorch layout) + one-time Pallas-ready preparation
# ----------------------------------------------------------------------------
def init_params(key, input_channels, action_dim, height, width):
    convw = conv2d_size_out(conv2d_size_out(conv2d_size_out(width, 8, 4), 4, 2), 3, 1)
    convh = conv2d_size_out(conv2d_size_out(conv2d_size_out(height, 8, 4), 4, 2), 3, 1)
    linear_input_size = convw * convh * 64

    ks = jax.random.split(key, 10)

    def nrm(k, shape, scale):
        return (scale * jax.random.normal(k, shape)).astype(jnp.float32)

    return {
        "conv1_w": nrm(ks[0], (32, input_channels, 8, 8), 0.05),
        "conv1_b": nrm(ks[1], (32,), 0.05),
        "conv2_w": nrm(ks[2], (64, 32, 4, 4), 0.05),
        "conv2_b": nrm(ks[3], (64,), 0.05),
        "conv3_w": nrm(ks[4], (64, 64, 3, 3), 0.05),
        "conv3_b": nrm(ks[5], (64,), 0.05),
        # fc weights stored transposed (in_features, out_features); fc1 rows are
        # in PyTorch's NCHW flatten order (c, h, w).
        "fc1_w": nrm(ks[6], (linear_input_size, 512), 0.02),
        "fc1_b": nrm(ks[7], (512,), 0.02),
        "fc2_w": nrm(ks[8], (512, action_dim), 0.02),
        "fc2_b": nrm(ks[9], (action_dim,), 0.02),
    }


def _reorder_conv_weight(w_pt):
    """(Cout, Cin, KH, KW) -> (Cin*KH*KW, Cout), matching (cin, kh, kw) patches."""
    Cout, Cin, KH, KW = w_pt.shape
    return jnp.transpose(w_pt, (1, 2, 3, 0)).reshape(Cin * KH * KW, Cout)


def _pad_matmul_weight(w, b):
    K, N = w.shape
    Kp, Np = _round_up(K, 128), _round_up(N, 128)
    w_p = jnp.pad(w, ((0, Kp - K), (0, Np - N))).astype(jnp.bfloat16)
    b_p = jnp.pad(b, (0, Np - N)).astype(jnp.float32).reshape(1, Np)
    return w_p, b_p


def prepare_params(params, height, width):
    """One-time: reorder/permute, zero-pad to lane-dense tiles and cast to bf16
    so the per-step forward never touches an f32 weight or pads in the hot path."""
    convw = conv2d_size_out(conv2d_size_out(conv2d_size_out(width, 8, 4), 4, 2), 3, 1)
    convh = conv2d_size_out(conv2d_size_out(conv2d_size_out(height, 8, 4), 4, 2), 3, 1)
    C3 = 64

    prep = {}
    for i in (1, 2, 3):
        w = _reorder_conv_weight(params[f"conv{i}_w"])
        prep[f"conv{i}_w"], prep[f"conv{i}_b"] = _pad_matmul_weight(
            w, params[f"conv{i}_b"])

    # fc1 rows: PyTorch NCHW flatten (c, h, w) -> NHWC flatten (h, w, c) so the
    # conv3 output can be flattened with a plain reshape (no transpose).
    fc1_w = params["fc1_w"].reshape(C3, convh, convw, -1)
    fc1_w = jnp.transpose(fc1_w, (1, 2, 0, 3)).reshape(convh * convw * C3, -1)
    prep["fc1_w"], prep["fc1_b"] = _pad_matmul_weight(fc1_w, params["fc1_b"])
    prep["fc2_w"], prep["fc2_b"] = _pad_matmul_weight(params["fc2_w"], params["fc2_b"])
    return prep


# ----------------------------------------------------------------------------
# Forward (Pallas path)
# ----------------------------------------------------------------------------
def qnetwork_forward(x_nchw, prep, *, action_dim):
    x = x_nchw.astype(jnp.float32)
    # conv1 consumes NCHW directly; patches come out NHWC; activations stay bf16.
    x = conv2d_relu(x, prep["conv1_w"], prep["conv1_b"], 8, 8, 4, 32, data_format="NCHW")
    x = conv2d_relu(x, prep["conv2_w"], prep["conv2_b"], 4, 4, 2, 64, data_format="NHWC")
    x = conv2d_relu(x, prep["conv3_w"], prep["conv3_b"], 3, 3, 1, 64, data_format="NHWC")
    B = x.shape[0]
    x = x.reshape(B, -1)                            # NHWC flatten, fc1_w pre-permuted
    K1 = x.shape[1]
    K1p = prep["fc1_w"].shape[0]
    if K1p != K1:
        x = jnp.pad(x, ((0, 0), (0, K1p - K1)))
    out = fused_fc(x, prep["fc1_w"], prep["fc1_b"], prep["fc2_w"], prep["fc2_b"])
    return out[:, :action_dim]


# ----------------------------------------------------------------------------
# Pure-JAX reference: PyTorch-layout weights, NCHW flatten, f32 activations,
# bf16 only at matmul operands — a genuinely different path that validates the
# fc1 row permutation, padding and bf16 intermediate writeback of the Pallas path.
# ----------------------------------------------------------------------------
def _ref_mm(a, w, b, relu):
    out = jnp.dot(a.astype(jnp.bfloat16), w.astype(jnp.bfloat16),
                  preferred_element_type=jnp.float32) + b[None, :]
    return jnp.maximum(out, 0.0) if relu else out


def qnetwork_reference(x_nchw, params):
    def conv(x, w_pt, b, stride, df):
        Cout = w_pt.shape[0]
        a, (B, Ho, Wo) = _extract_patches(x, w_pt.shape[2], w_pt.shape[3], stride, df)
        w = _reorder_conv_weight(w_pt)
        return _ref_mm(a, w, b, True).reshape(B, Ho, Wo, Cout)

    x = conv(x_nchw.astype(jnp.float32), params["conv1_w"], params["conv1_b"], 4, "NCHW")
    x = conv(x, params["conv2_w"], params["conv2_b"], 2, "NHWC")
    x = conv(x, params["conv3_w"], params["conv3_b"], 1, "NHWC")
    B = x.shape[0]
    x = jnp.transpose(x, (0, 3, 1, 2)).reshape(B, -1)   # PyTorch NCHW flatten
    x = _ref_mm(x, params["fc1_w"], params["fc1_b"], True)
    x = _ref_mm(x, params["fc2_w"], params["fc2_b"], False)
    return x


if __name__ == "__main__":
    BATCH, IN_CH, H, W = 2, 4, 64, 64
    ACTION_DIM = 6

    key = jax.random.PRNGKey(0)
    k_params, k_x = jax.random.split(key)
    params = init_params(k_params, IN_CH, ACTION_DIM, H, W)
    prep = prepare_params(params, H, W)             # one-time weight prep
    x = jax.random.normal(k_x, (BATCH, IN_CH, H, W), dtype=jnp.float32)

    fwd = jax.jit(functools.partial(qnetwork_forward, action_dim=ACTION_DIM))
    out = jax.block_until_ready(fwd(x, prep))

    ref = jax.block_until_ready(jax.jit(qnetwork_reference)(x, params))
    assert out.shape == (BATCH, ACTION_DIM), out.shape
    max_err = float(jnp.max(jnp.abs(out - ref)))
    assert jnp.allclose(out, ref, atol=1e-2, rtol=1e-2), max_err

    print("KERNEL_OK")
</pallas_src>

<mosaic_0001>
module attributes {stable_mosaic.version = 11 : i64} {
  func.func @_mm_bias_relu_kernel(%arg0: i32, %arg1: memref<464x256xbf16, #tpu.memory_space<vmem>>, %arg2: memref<256x128xbf16, #tpu.memory_space<vmem>>, %arg3: memref<1x128xf32, #tpu.memory_space<vmem>>, %arg4: memref<464x128xbf16, #tpu.memory_space<vmem>>) attributes {dimension_semantics = [#tpu.dimension_semantics<parallel>], iteration_bounds = array<i64: 1>, scalar_prefetch = 0 : i64, scratch_operands = 0 : i64, tpu.core_type = #tpu.core_type<tc>, window_params = [{transform_indices = @transform_0, window_bounds = array<i64: 464, 256>}, {pipeline_mode = #tpu.pipeline_mode<synchronous>, transform_indices = @transform_1, window_bounds = array<i64: 256, 128>}, {pipeline_mode = #tpu.pipeline_mode<synchronous>, transform_indices = @transform_2, window_bounds = array<i64: 1, 128>}, {transform_indices = @transform_3, window_bounds = array<i64: 464, 128>}]} {
    %c0 = arith.constant 0 : index
    %c0_0 = arith.constant 0 : index
    %0 = vector.load %arg1[%c0, %c0_0] : memref<464x256xbf16, #tpu.memory_space<vmem>>, vector<464x256xbf16>
    %c0_1 = arith.constant 0 : index
    %c0_2 = arith.constant 0 : index
    %1 = vector.load %arg2[%c0_1, %c0_2] : memref<256x128xbf16, #tpu.memory_space<vmem>>, vector<256x128xbf16>
    %cst = arith.constant dense<0.000000e+00> : vector<464x128xf32>
    %2 = tpu.matmul %0, %1, %cst {dimension_numbers = #tpu.dot_dimension_numbers<[1], [0], [0], [1], [0, 0, 1, 1], [], []>} : vector<464x256xbf16>, vector<256x128xbf16>, vector<464x128xf32> -> vector<464x128xf32>
    %c0_3 = arith.constant 0 : index
    %c0_4 = arith.constant 0 : index
    %3 = vector.load %arg3[%c0_3, %c0_4] : memref<1x128xf32, #tpu.memory_space<vmem>>, vector<1x128xf32>
    %4 = vector.broadcast %3 : vector<1x128xf32> to vector<464x128xf32>
    %5 = arith.addf %2, %4 : vector<464x128xf32>
    %cst_5 = arith.constant 0.000000e+00 : f32
    %6 = vector.broadcast %cst_5 : f32 to vector<464x128xf32>
    %7 = arith.maximumf %5, %6 : vector<464x128xf32>
    %8 = arith.truncf %7 : vector<464x128xf32> to vector<464x128xbf16>
    %c0_6 = arith.constant 0 : index
    %c0_7 = arith.constant 0 : index
    %9 = vector.load %arg4[%c0_6, %c0_7] : memref<464x128xbf16, #tpu.memory_space<vmem>>, vector<464x128xbf16>
    tpu.vector_store %arg4[%c0_6, %c0_7], %8 {strides = array<i32>} : memref<464x128xbf16, #tpu.memory_space<vmem>>, vector<464x128xbf16>,
    return
  }
  func.func @transform_0(%arg0: i32) -> (i32, i32) {
    %c0_i32 = arith.constant 0 : i32
    %c0_i32_0 = arith.constant 0 : i32
    return %arg0, %c0_i32 : i32, i32
  }
  func.func @transform_1(%arg0: i32) -> (i32, i32) {
    %c0_i32 = arith.constant 0 : i32
    %c0_i32_0 = arith.constant 0 : i32
    %c0_i32_1 = arith.constant 0 : i32
    return %c0_i32, %c0_i32_0 : i32, i32
  }
  func.func @transform_2(%arg0: i32) -> (i32, i32) {
    %c0_i32 = arith.constant 0 : i32
    %c0_i32_0 = arith.constant 0 : i32
    %c0_i32_1 = arith.constant 0 : i32
    return %c0_i32, %c0_i32_0 : i32, i32
  }
  func.func @transform_3(%arg0: i32) -> (i32, i32) {
    %c0_i32 = arith.constant 0 : i32
    %c0_i32_0 = arith.constant 0 : i32
    return %arg0, %c0_i32 : i32, i32
  }
}

module attributes {stable_mosaic.version = 11 : i64} {
  func.func @_mm_bias_relu_kernel(%arg0: i32, %arg1: memref<80x512xbf16, #tpu.memory_space<vmem>>, %arg2: memref<512x128xbf16, #tpu.memory_space<vmem>>, %arg3: memref<1x128xf32, #tpu.memory_space<vmem>>, %arg4: memref<80x128xbf16, #tpu.memory_space<vmem>>) attributes {dimension_semantics = [#tpu.dimension_semantics<parallel>], iteration_bounds = array<i64: 1>, scalar_prefetch = 0 : i64, scratch_operands = 0 : i64, tpu.core_type = #tpu.core_type<tc>, window_params = [{transform_indices = @transform_0, window_bounds = array<i64: 80, 512>}, {pipeline_mode = #tpu.pipeline_mode<synchronous>, transform_indices = @transform_1, window_bounds = array<i64: 512, 128>}, {pipeline_mode = #tpu.pipeline_mode<synchronous>, transform_indices = @transform_2, window_bounds = array<i64: 1, 128>}, {transform_indices = @transform_3, window_bounds = array<i64: 80, 128>}]} {
    %c0 = arith.constant 0 : index
    %c0_0 = arith.constant 0 : index
    %0 = vector.load %arg1[%c0, %c0_0] : memref<80x512xbf16, #tpu.memory_space<vmem>>, vector<80x512xbf16>
    %c0_1 = arith.constant 0 : index
    %c0_2 = arith.constant 0 : index
    %1 = vector.load %arg2[%c0_1, %c0_2] : memref<512x128xbf16, #tpu.memory_space<vmem>>, vector<512x128xbf16>
    %cst = arith.constant dense<0.000000e+00> : vector<80x128xf32>
    %2 = tpu.matmul %0, %1, %cst {dimension_numbers = #tpu.dot_dimension_numbers<[1], [0], [0], [1], [0, 0, 1, 1], [], []>} : vector<80x512xbf16>, vector<512x128xbf16>, vector<80x128xf32> -> vector<80x128xf32>
    %c0_3 = arith.constant 0 : index
    %c0_4 = arith.constant 0 : index
    %3 = vector.load %arg3[%c0_3, %c0_4] : memref<1x128xf32, #tpu.memory_space<vmem>>, vector<1x128xf32>
    %4 = vector.broadcast %3 : vector<1x128xf32> to vector<80x128xf32>
    %5 = arith.addf %2, %4 : vector<80x128xf32>
    %cst_5 = arith.constant 0.000000e+00 : f32
    %6 = vector.broadcast %cst_5 : f32 to vector<80x128xf32>
    %7 = arith.maximumf %5, %6 : vector<80x128xf32>
    %8 = arith.truncf %7 : vector<80x128xf32> to vector<80x128xbf16>
    %c0_6 = arith.constant 0 : index
    %c0_7 = arith.constant 0 : index
    %9 = vector.load %arg4[%c0_6, %c0_7] : memref<80x128xbf16, #tpu.memory_space<vmem>>, vector<80x128xbf16>
    tpu.vector_store %arg4[%c0_6, %c0_7], %8 {strides = array<i32>} : memref<80x128xbf16, #tpu.memory_space<vmem>>, vector<80x128xbf16>,
    return
  }
  func.func @transform_0(%arg0: i32) -> (i32, i32) {
    %c0_i32 = arith.constant 0 : i32
    %c0_i32_0 = arith.constant 0 : i32
    return %arg0, %c0_i32 : i32, i32
  }
  func.func @transform_1(%arg0: i32) -> (i32, i32) {
    %c0_i32 = arith.constant 0 : i32
    %c0_i32_0 = arith.constant 0 : i32
    %c0_i32_1 = arith.constant 0 : i32
    return %c0_i32, %c0_i32_0 : i32, i32
  }
  func.func @transform_2(%arg0: i32) -> (i32, i32) {
    %c0_i32 = arith.constant 0 : i32
    %c0_i32_0 = arith.constant 0 : i32
    %c0_i32_1 = arith.constant 0 : i32
    return %c0_i32, %c0_i32_0 : i32, i32
  }
  func.func @transform_3(%arg0: i32) -> (i32, i32) {
    %c0_i32 = arith.constant 0 : i32
    %c0_i32_0 = arith.constant 0 : i32
    return %arg0, %c0_i32 : i32, i32
  }
}

module attributes {stable_mosaic.version = 11 : i64} {
  func.func @_mm_bias_relu_kernel(%arg0: i32, %arg1: memref<32x640xbf16, #tpu.memory_space<vmem>>, %arg2: memref<640x128xbf16, #tpu.memory_space<vmem>>, %arg3: memref<1x128xf32, #tpu.memory_space<vmem>>, %arg4: memref<32x128xbf16, #tpu.memory_space<vmem>>) attributes {dimension_semantics = [#tpu.dimension_semantics<parallel>], iteration_bounds = array<i64: 1>, scalar_prefetch = 0 : i64, scratch_operands = 0 : i64, tpu.core_type = #tpu.core_type<tc>, window_params = [{transform_indices = @transform_0, window_bounds = array<i64: 32, 640>}, {pipeline_mode = #tpu.pipeline_mode<synchronous>, transform_indices = @transform_1, window_bounds = array<i64: 640, 128>}, {pipeline_mode = #tpu.pipeline_mode<synchronous>, transform_indices = @transform_2, window_bounds = array<i64: 1, 128>}, {transform_indices = @transform_3, window_bounds = array<i64: 32, 128>}]} {
    %c0 = arith.constant 0 : index
    %c0_0 = arith.constant 0 : index
    %0 = vector.load %arg1[%c0, %c0_0] : memref<32x640xbf16, #tpu.memory_space<vmem>>, vector<32x640xbf16>
    %c0_1 = arith.constant 0 : index
    %c0_2 = arith.constant 0 : index
    %1 = vector.load %arg2[%c0_1, %c0_2] : memref<640x128xbf16, #tpu.memory_space<vmem>>, vector<640x128xbf16>
    %cst = arith.constant dense<0.000000e+00> : vector<32x128xf32>
    %2 = tpu.matmul %0, %1, %cst {dimension_numbers = #tpu.dot_dimension_numbers<[1], [0], [0], [1], [0, 0, 1, 1], [], []>} : vector<32x640xbf16>, vector<640x128xbf16>, vector<32x128xf32> -> vector<32x128xf32>
    %c0_3 = arith.constant 0 : index
    %c0_4 = arith.constant 0 : index
    %3 = vector.load %arg3[%c0_3, %c0_4] : memref<1x128xf32, #tpu.memory_space<vmem>>, vector<1x128xf32>
    %4 = vector.broadcast %3 : vector<1x128xf32> to vector<32x128xf32>
    %5 = arith.addf %2, %4 : vector<32x128xf32>
    %cst_5 = arith.constant 0.000000e+00 : f32
    %6 = vector.broadcast %cst_5 : f32 to vector<32x128xf32>
    %7 = arith.maximumf %5, %6 : vector<32x128xf32>
    %8 = arith.truncf %7 : vector<32x128xf32> to vector<32x128xbf16>
    %c0_6 = arith.constant 0 : index
    %c0_7 = arith.constant 0 : index
    %9 = vector.load %arg4[%c0_6, %c0_7] : memref<32x128xbf16, #tpu.memory_space<vmem>>, vector<32x128xbf16>
    tpu.vector_store %arg4[%c0_6, %c0_7], %8 {strides = array<i32>} : memref<32x128xbf16, #tpu.memory_space<vmem>>, vector<32x128xbf16>,
    return
  }
  func.func @transform_0(%arg0: i32) -> (i32, i32) {
    %c0_i32 = arith.constant 0 : i32
    %c0_i32_0 = arith.constant 0 : i32
    return %arg0, %c0_i32 : i32, i32
  }
  func.func @transform_1(%arg0: i32) -> (i32, i32) {
    %c0_i32 = arith.constant 0 : i32
    %c0_i32_0 = arith.constant 0 : i32
    %c0_i32_1 = arith.constant 0 : i32
    return %c0_i32, %c0_i32_0 : i32, i32
  }
  func.func @transform_2(%arg0: i32) -> (i32, i32) {
    %c0_i32 = arith.constant 0 : i32
    %c0_i32_0 = arith.constant 0 : i32
    %c0_i32_1 = arith.constant 0 : i32
    return %c0_i32, %c0_i32_0 : i32, i32
  }
  func.func @transform_3(%arg0: i32) -> (i32, i32) {
    %c0_i32 = arith.constant 0 : i32
    %c0_i32_0 = arith.constant 0 : i32
    return %arg0, %c0_i32 : i32, i32
  }
}

module attributes {stable_mosaic.version = 11 : i64} {
  func.func @_fused_fc_kernel(%arg0: i32, %arg1: memref<16x1024xbf16, #tpu.memory_space<vmem>>, %arg2: memref<1024x512xbf16, #tpu.memory_space<vmem>>, %arg3: memref<1x512xf32, #tpu.memory_space<vmem>>, %arg4: memref<512x128xbf16, #tpu.memory_space<vmem>>, %arg5: memref<1x128xf32, #tpu.memory_space<vmem>>, %arg6: memref<16x128xf32, #tpu.memory_space<vmem>>, %arg7: memref<16x512xf32, #tpu.memory_space<vmem>>) attributes {dimension_semantics = [#tpu.dimension_semantics<arbitrary>], iteration_bounds = array<i64: 1>, scalar_prefetch = 0 : i64, scratch_operands = 1 : i64, tpu.core_type = #tpu.core_type<tc>, window_params = [{transform_indices = @transform_0, window_bounds = array<i64: 16, 1024>}, {transform_indices = @transform_1, window_bounds = array<i64: 1024, 512>}, {pipeline_mode = #tpu.pipeline_mode<synchronous>, transform_indices = @transform_2, window_bounds = array<i64: 1, 512>}, {pipeline_mode = #tpu.pipeline_mode<synchronous>, transform_indices = @transform_3, window_bounds = array<i64: 512, 128>}, {pipeline_mode = #tpu.pipeline_mode<synchronous>, transform_indices = @transform_4, window_bounds = array<i64: 1, 128>}, {pipeline_mode = #tpu.pipeline_mode<synchronous>, transform_indices = @transform_5, window_bounds = array<i64: 16, 128>}]} {
    %c0_i32 = arith.constant 0 : i32
    %0 = arith.cmpi eq, %arg0, %c0_i32 : i32
    %1 = arith.extui %0 : i1 to i32
    %c0_i32_0 = arith.constant 0 : i32
    %2 = arith.cmpi ne, %1, %c0_i32_0 : i32
    scf.if %2 {
      %cst_10 = arith.constant 0.000000e+00 : f32
      %12 = vector.broadcast %cst_10 : f32 to vector<16x512xf32>
      %c0_11 = arith.constant 0 : index
      %c0_12 = arith.constant 0 : index
      %13 = vector.load %arg7[%c0_11, %c0_12] : memref<16x512xf32, #tpu.memory_space<vmem>>, vector<16x512xf32>
      tpu.vector_store %arg7[%c0_11, %c0_12], %12 {strides = array<i32>} : memref<16x512xf32, #tpu.memory_space<vmem>>, vector<16x512xf32>,
    } else {
    }
    %c0 = arith.constant 0 : index
    %c0_1 = arith.constant 0 : index
    %3 = vector.load %arg7[%c0, %c0_1] : memref<16x512xf32, #tpu.memory_space<vmem>>, vector<16x512xf32>
    %c0_2 = arith.constant 0 : index
    %c0_3 = arith.constant 0 : index
    %4 = vector.load %arg1[%c0_2, %c0_3] : memref<16x1024xbf16, #tpu.memory_space<vmem>>, vector<16x1024xbf16>
    %c0_4 = arith.constant 0 : index
    %c0_5 = arith.constant 0 : index
    %5 = vector.load %arg2[%c0_4, %c0_5] : memref<1024x512xbf16, #tpu.memory_space<vmem>>, vector<1024x512xbf16>
    %cst = arith.constant dense<0.000000e+00> : vector<16x512xf32>
    %6 = tpu.matmul %4, %5, %cst {dimension_numbers = #tpu.dot_dimension_numbers<[1], [0], [0], [1], [0, 0, 1, 1], [], []>} : vector<16x1024xbf16>, vector<1024x512xbf16>, vector<16x512xf32> -> vector<16x512xf32>
    %7 = arith.addf %3, %6 : vector<16x512xf32>
    %c0_6 = arith.constant 0 : index
    %c0_7 = arith.constant 0 : index
    %8 = vector.load %arg7[%c0_6, %c0_7] : memref<16x512xf32, #tpu.memory_space<vmem>>, vector<16x512xf32>
    tpu.vector_store %arg7[%c0_6, %c0_7], %7 {strides = array<i32>} : memref<16x512xf32, #tpu.memory_space<vmem>>, vector<16x512xf32>,
    %c0_i32_8 = arith.constant 0 : i32
    %9 = arith.cmpi eq, %arg0, %c0_i32_8 : i32
    %10 = arith.extui %9 : i1 to i32
    %c0_i32_9 = arith.constant 0 : i32
    %11 = arith.cmpi ne, %10, %c0_i32_9 : i32
    scf.if %11 {
      %c0_10 = arith.constant 0 : index
      %c0_11 = arith.constant 0 : index
      %12 = vector.load %arg7[%c0_10, %c0_11] : memref<16x512xf32, #tpu.memory_space<vmem>>, vector<16x512xf32>
      %c0_12 = arith.constant 0 : index
      %c0_13 = arith.constant 0 : index
      %13 = vector.load %arg3[%c0_12, %c0_13] : memref<1x512xf32, #tpu.memory_space<vmem>>, vector<1x512xf32>
      %14 = vector.broadcast %13 : vector<1x512xf32> to vector<16x512xf32>
      %15 = arith.addf %12, %14 : vector<16x512xf32>
      %cst_14 = arith.constant 0.000000e+00 : f32
      %16 = vector.broadcast %cst_14 : f32 to vector<16x512xf32>
      %17 = arith.maximumf %15, %16 : vector<16x512xf32>
      %18 = arith.truncf %17 : vector<16x512xf32> to vector<16x512xbf16>
      %c0_15 = arith.constant 0 : index
      %c0_16 = arith.constant 0 : index
      %19 = vector.load %arg4[%c0_15, %c0_16] : memref<512x128xbf16, #tpu.memory_space<vmem>>, vector<512x128xbf16>
      %cst_17 = arith.constant dense<0.000000e+00> : vector<16x128xf32>
      %20 = tpu.matmul %18, %19, %cst_17 {dimension_numbers = #tpu.dot_dimension_numbers<[1], [0], [0], [1], [0, 0, 1, 1], [], []>} : vector<16x512xbf16>, vector<512x128xbf16>, vector<16x128xf32> -> vector<16x128xf32>
      %c0_18 = arith.constant 0 : index
      %c0_19 = arith.constant 0 : index
      %21 = vector.load %arg5[%c0_18, %c0_19] : memref<1x128xf32, #tpu.memory_space<vmem>>, vector<1x128xf32>
      %22 = vector.broadcast %21 : vector<1x128xf32> to vector<16x128xf32>
      %23 = arith.addf %20, %22 : vector<16x128xf32>
      %c0_20 = arith.constant 0 : index
      %c0_21 = arith.constant 0 : index
      %24 = vector.load %arg6[%c0_20, %c0_21] : memref<16x128xf32, #tpu.memory_space<vmem>>, vector<16x128xf32>
      tpu.vector_store %arg6[%c0_20, %c0_21], %23 {strides = array<i32>} : memref<16x128xf32, #tpu.memory_space<vmem>>, vector<16x128xf32>,
    } else {
    }
    return
  }
  func.func @transform_0(%arg0: i32) -> (i32, i32) {
    %c0_i32 = arith.constant 0 : i32
    %c0_i32_0 = arith.constant 0 : i32
    return %c0_i32, %arg0 : i32, i32
  }
  func.func @transform_1(%arg0: i32) -> (i32, i32) {
    %c0_i32 = arith.constant 0 : i32
    %c0_i32_0 = arith.constant 0 : i32
    return %arg0, %c0_i32 : i32, i32
  }
  func.func @transform_2(%arg0: i32) -> (i32, i32) {
    %c0_i32 = arith.constant 0 : i32
    %c0_i32_0 = arith.constant 0 : i32
    %c0_i32_1 = arith.constant 0 : i32
    return %c0_i32, %c0_i32_0 : i32, i32
  }
  func.func @transform_3(%arg0: i32) -> (i32, i32) {
    %c0_i32 = arith.constant 0 : i32
    %c0_i32_0 = arith.constant 0 : i32
    %c0_i32_1 = arith.constant 0 : i32
    return %c0_i32, %c0_i32_0 : i32, i32
  }
  func.func @transform_4(%arg0: i32) -> (i32, i32) {
    %c0_i32 = arith.constant 0 : i32
    %c0_i32_0 = arith.constant 0 : i32
    %c0_i32_1 = arith.constant 0 : i32
    return %c0_i32, %c0_i32_0 : i32, i32
  }
  func.func @transform_5(%arg0: i32) -> (i32, i32) {
    %c0_i32 = arith.constant 0 : i32
    %c0_i32_0 = arith.constant 0 : i32
    %c0_i32_1 = arith.constant 0 : i32
    return %c0_i32, %c0_i32_0 : i32, i32
  }
}

</mosaic_0001>

<bundles_post_ra>
// kernel: qnetwork_forward.4
= control target key start
LH: loop header
LB: loop body
LE: loop exit
PB: predicated region body
PF: predicated region fallthrough
CT: control target
= control target key end

     0   :  { %v1615_v0 = vmov 0   ;;  %s2040_s1 = inlined_call_operand.vmem [shape: bf16[256,128], index: 1, kind: input, shape index: {}]   ;;  %s2041_s0 = inlined_call_operand.vmem [shape: bf16[464,256], index: 0, kind: input, shape index: {}]   ;;  %s2042_s2 = inlined_call_operand.vmem [shape: f32[1,128], index: 2, kind: input, shape index: {}]   ;;  %s2043_s3 = inlined_call_operand.vmem [shape: bf16[464,128], index: 3, kind: output, shape index: {}]  }
   0x1   :  { %498 = vmatprep.subr.bf16.mxu0 %v1615_v0  ;;  %v1512_v1 = vld [vmem:[%s2040_s1] sm:$0xff]   ;;  %1479 = vmatprep.subr.bf16.mxu1 %v1615_v0  ;;  %v1513_v2 = vld [vmem:[%s2040_s1 + $0x8] sm:$0xff]   ;;  %v1514_v3 = vld [vmem:[%s2040_s1 + $0x10] sm:$0xff]  }
   0x2   :  { %499 = vmatpush1.bf16.msra.mxu0 %v1512_v1  ;;  %1495 = vmatpush1.bf16.msra.mxu1 %v1512_v1  ;;  %v1515_v4 = vld [vmem:[%s2040_s1 + $0x18] sm:$0xff]   ;;  %v1516_v5 = vld [vmem:[%s2040_s1 + $0x20] sm:$0xff]   ;;  %v1517_v7 = vld [vmem:[%s2040_s1 + $0x28] sm:$0xff]  }
   0x3   :  { %500 = vmatprep.subr.bf16.mxu0 %v1615_v0  ;;  %1480 = vmatprep.subr.bf16.mxu1 %v1615_v0  ;;  %v1530_v6 = vld [vmem:[%s2041_s0 + $0x4] ss:$8 sps:$4 sm:$0xff]   ;;  %v1533_v8 = vld [vmem:[%s2041_s0 + $0xf4] ss:$8 sps:$4 sm:$0xff]   ;;  %v1528_v19 = vld [vmem:[%s2041_s0] ss:$8 sps:$4 sm:$0xff]  }
   0x4   :  { %530 = vmatprep.mubr.bf16.mxu0 %v1530_v6  ;;  %650 = vmatprep.mubr.bf16.mxu1 %v1533_v8  ;;  %v1518_v9 = vld [vmem:[%s2040_s1 + $0x30] sm:$0xff]   ;;  %v1519_v10 = vld [vmem:[%s2040_s1 + $0x38] sm:$0xff]   ;;  %v1520_v11 = vld [vmem:[%s2040_s1 + $0x40] sm:$0xff]  }
   0x5   :  { %v1521_v12 = vld [vmem:[%s2040_s1 + $0x48] sm:$0xff]   ;;  %v1522_v13 = vld [vmem:[%s2040_s1 + $0x50] sm:$0xff]   ;;  %v1523_v14 = vld [vmem:[%s2040_s1 + $0x58] sm:$0xff]  }
   0x6   :  { %501 = vmatpush1.bf16.msra.mxu0 %v1513_v2  ;;  %1496 = vmatpush1.bf16.msra.mxu1 %v1513_v2  ;;  %v1524_v15 = vld [vmem:[%s2040_s1 + $0x60] sm:$0xff]   ;;  %v1525_v16 = vld [vmem:[%s2040_s1 + $0x68] sm:$0xff]   ;;  %v1526_v17 = vld [vmem:[%s2040_s1 + $0x70] sm:$0xff]  }
   0x7   :  { %502 = vmatprep.subr.bf16.mxu0 %v1615_v0  ;;  %1481 = vmatprep.subr.bf16.mxu1 %v1615_v0  ;;  %v1527_v18 = vld [vmem:[%s2040_s1 + $0x78] sm:$0xff]   ;;  %v1537_v22 = vld [vmem:[%s2041_s0 + $0x104] ss:$8 sps:$4 sm:$0xff]   ;;  %v1539_v24 = vld [vmem:[%s2041_s0 + $0x100] ss:$8 sps:$4 sm:$0xff]  }
   0x8   :  { %v1531_v20 = vld [vmem:[%s2041_s0 + $0xf0] ss:$8 sps:$4 sm:$0xff]   ;;  %v1534_v21 = vld [vmem:[%s2041_s0 + $0x14] ss:$8 sps:$4 sm:$0xff]   ;;  %v1540_v25 = vld [vmem:[%s2041_s0 + $0x24] ss:$8 sps:$4 sm:$0xff]  }
   0x9   :  { %v1536_v23 = vld [vmem:[%s2041_s0 + $0x10] ss:$8 sps:$4 sm:$0xff]   ;;  %v1543_v26 = vld [vmem:[%s2041_s0 + $0x114] ss:$8 sps:$4 sm:$0xff]   ;;  %v1542_v27 = vld [vmem:[%s2041_s0 + $0x20] ss:$8 sps:$4 sm:$0xff]  }
   0xa   :  { %503 = vmatpush1.bf16.msra.mxu0 %v1514_v3  ;;  %1497 = vmatpush1.bf16.msra.mxu1 %v1514_v3  ;;  %v1545_v28 = vld [vmem:[%s2041_s0 + $0x110] ss:$8 sps:$4 sm:$0xff]   ;;  %v1546_v29 = vld [vmem:[%s2041_s0 + $0x34] ss:$8 sps:$4 sm:$0xff]   ;;  %v1549_v30 = vld [vmem:[%s2041_s0 + $0x124] ss:$8 sps:$4 sm:$0xff]  }
   0xb   :  { %504 = vmatprep.subr.bf16.mxu0 %v1615_v0  ;;  %1482 = vmatprep.subr.bf16.mxu1 %v1615_v0  ;;  %v1548_v31 = vld [vmem:[%s2041_s0 + $0x30] ss:$8 sps:$4 sm:$0xff]   ;;  %v1551_v32 = vld [vmem:[%s2041_s0 + $0x120] ss:$8 sps:$4 sm:$0xff]   ;;  %v1552_v33 = vld [vmem:[%s2041_s0 + $0x44] ss:$8 sps:$4 sm:$0xff]  }
   0xc   :  { %v1555_v34 = vld [vmem:[%s2041_s0 + $0x134] ss:$8 sps:$4 sm:$0xff]   ;;  %v1554_v35 = vld [vmem:[%s2041_s0 + $0x40] ss:$8 sps:$4 sm:$0xff]   ;;  %v1557_v36 = vld [vmem:[%s2041_s0 + $0x130] ss:$8 sps:$4 sm:$0xff]  }
   0xd   :  { %v1558_v37 = vld [vmem:[%s2041_s0 + $0x54] ss:$8 sps:$4 sm:$0xff]   ;;  %v1561_v38 = vld [vmem:[%s2041_s0 + $0x144] ss:$8 sps:$4 sm:$0xff]   ;;  %v1560_v39 = vld [vmem:[%s2041_s0 + $0x50] ss:$8 sps:$4 sm:$0xff]  }
   0xe   :  { %505 = vmatpush1.bf16.msra.mxu0 %v1515_v4  ;;  %1498 = vmatpush1.bf16.msra.mxu1 %v1515_v4  ;;  %v1563_v40 = vld [vmem:[%s2041_s0 + $0x140] ss:$8 sps:$4 sm:$0xff]   ;;  %v1564_v41 = vld [vmem:[%s2041_s0 + $0x64] ss:$8 sps:$4 sm:$0xff]   ;;  %v1567_v42 = vld [vmem:[%s2041_s0 + $0x154] ss:$8 sps:$4 sm:$0xff]  }
   0xf   :  { %506 = vmatprep.subr.bf16.mxu0 %v1615_v0  ;;  %1483 = vmatprep.subr.bf16.mxu1 %v1615_v0  ;;  %v1566_v43 = vld [vmem:[%s2041_s0 + $0x60] ss:$8 sps:$4 sm:$0xff]   ;;  %v1569_v44 = vld [vmem:[%s2041_s0 + $0x150] ss:$8 sps:$4 sm:$0xff]   ;;  %v1570_v45 = vld [vmem:[%s2041_s0 + $0x74] ss:$8 sps:$4 sm:$0xff]  }
  0x10   :  { %v1573_v46 = vld [vmem:[%s2041_s0 + $0x164] ss:$8 sps:$4 sm:$0xff]   ;;  %v1572_v47 = vld [vmem:[%s2041_s0 + $0x70] ss:$8 sps:$4 sm:$0xff]   ;;  %v1575_v48 = vld [vmem:[%s2041_s0 + $0x160] ss:$8 sps:$4 sm:$0xff]  }
  0x11   :  { %v1576_v49 = vld [vmem:[%s2041_s0 + $0x84] ss:$8 sps:$4 sm:$0xff]   ;;  %v1579_v50 = vld [vmem:[%s2041_s0 + $0x174] ss:$8 sps:$4 sm:$0xff]   ;;  %v1578_v51 = vld [vmem:[%s2041_s0 + $0x80] ss:$8 sps:$4 sm:$0xff]  }
  0x12   :  { %507 = vmatpush1.bf16.msra.mxu0 %v1516_v5  ;;  %1499 = vmatpush1.bf16.msra.mxu1 %v1516_v5  ;;  %v1581_v52 = vld [vmem:[%s2041_s0 + $0x170] ss:$8 sps:$4 sm:$0xff]   ;;  %v1582_v53 = vld [vmem:[%s2041_s0 + $0x94] ss:$8 sps:$4 sm:$0xff]   ;;  %v1585_v54 = vld [vmem:[%s2041_s0 + $0x184] ss:$8 sps:$4 sm:$0xff]  }
  0x13   :  { %508 = vmatprep.subr.bf16.mxu0 %v1615_v0  ;;  %1484 = vmatprep.subr.bf16.mxu1 %v1615_v0  ;;  %v1584_v55 = vld [vmem:[%s2041_s0 + $0x90] ss:$8 sps:$4 sm:$0xff]   ;;  %v1587_v56 = vld [vmem:[%s2041_s0 + $0x180] ss:$8 sps:$4 sm:$0xff]   ;;  %v1588_v57 = vld [vmem:[%s2041_s0 + $0xa4] ss:$8 sps:$4 sm:$0xff]  }
  0x14   :  { %v1591_v58 = vld [vmem:[%s2041_s0 + $0x194] ss:$8 sps:$4 sm:$0xff]   ;;  %v1590_v59 = vld [vmem:[%s2041_s0 + $0xa0] ss:$8 sps:$4 sm:$0xff]   ;;  %v1593_v60 = vld [vmem:[%s2041_s0 + $0x190] ss:$8 sps:$4 sm:$0xff]  }
  0x15   :  { %v1594_v61 = vld [vmem:[%s2041_s0 + $0xb4] ss:$8 sps:$4 sm:$0xff]   ;;  %v1597_v62 = vld [vmem:[%s2041_s0 + $0x1a4] ss:$8 sps:$4 sm:$0xff]   ;;  %v1596_v63 = vld [vmem:[%s2041_s0 + $0xb0] ss:$8 sps:$4 sm:$0xff]  }
  0x16   :  { %509 = vmatpush1.bf16.msra.mxu0 %v1517_v7  ;;  %1500 = vmatpush1.bf16.msra.mxu1 %v1517_v7  ;;  %v1600_v1 = vld [vmem:[%s2041_s0 + $0xc4] ss:$8 sps:$4 sm:$0xff]   ;;  %v1603_v2 = vld [vmem:[%s2041_s0 + $0x1b4] ss:$8 sps:$4 sm:$0xff]   ;;  %v1602_v3 = vld [vmem:[%s2041_s0 + $0xc0] ss:$8 sps:$4 sm:$0xff]  }
  0x17   :  { %510 = vmatprep.subr.bf16.mxu0 %v1615_v0  ;;  %1485 = vmatprep.subr.bf16.mxu1 %v1615_v0  ;;  %v1605_v4 = vld [vmem:[%s2041_s0 + $0x1b0] ss:$8 sps:$4 sm:$0xff]   ;;  %v1606_v5 = vld [vmem:[%s2041_s0 + $0xd4] ss:$8 sps:$4 sm:$0xff]   ;;  %v1609_v6 = vld [vmem:[%s2041_s0 + $0x1c4] ss:$8 sps:$4 sm:$0xff]  }
  0x18   :  { %v1608_v7 = vld [vmem:[%s2041_s0 + $0xd0] ss:$8 sps:$4 sm:$0xff]   ;;  %v1611_v8 = vld [vmem:[%s2041_s0 + $0x1c0] ss:$8 sps:$4 sm:$0xff]  }
  0x1a   :  { %511 = vmatpush1.bf16.msra.mxu0 %v1518_v9  ;;  %1501 = vmatpush1.bf16.msra.mxu1 %v1518_v9  ;;  %v1612_v9 = vld [vmem:[%s2041_s0 + $0xe4] ss:$8 sps:$4 sm:$0xff]  }
  0x1b   :  { %512 = vmatprep.subr.bf16.mxu0 %v1615_v0  ;;  %1486 = vmatprep.subr.bf16.mxu1 %v1615_v0 }
  0x1e   :  { %513 = vmatpush1.bf16.msra.mxu0 %v1519_v10  ;;  %1502 = vmatpush1.bf16.msra.mxu1 %v1519_v10  ;;  %v1614_v10 = vld [vmem:[%s2041_s0 + $0xe0] ss:$8 sps:$4 sm:$0xff]  }
  0x1f   :  { %514 = vmatprep.subr.bf16.mxu0 %v1615_v0  ;;  %1487 = vmatprep.subr.bf16.mxu1 %v1615_v0 }
  0x22   :  { %515 = vmatpush1.bf16.msra.mxu0 %v1520_v11  ;;  %1503 = vmatpush1.bf16.msra.mxu1 %v1520_v11  ;;  %v1893_v11 = vld [vmem:[%s2042_s2] ss:$0 sm:$0xff] }
  0x23   :  { %516 = vmatprep.subr.bf16.mxu0 %v1615_v0  ;;  %1488 = vmatprep.subr.bf16.mxu1 %v1615_v0 }
  0x26   :  { %517 = vmatpush1.bf16.msra.mxu0 %v1521_v12  ;;  %1504 = vmatpush1.bf16.msra.mxu1 %v1521_v12 }
  0x27   :  { %518 = vmatprep.subr.bf16.mxu0 %v1615_v0  ;;  %1489 = vmatprep.subr.bf16.mxu1 %v1615_v0 }
  0x2a   :  { %519 = vmatpush1.bf16.msra.mxu0 %v1522_v13  ;;  %1505 = vmatpush1.bf16.msra.mxu1 %v1522_v13 }
  0x2b   :  { %520 = vmatprep.subr.bf16.mxu0 %v1615_v0  ;;  %1490 = vmatprep.subr.bf16.mxu1 %v1615_v0 }
  0x2e   :  { %521 = vmatpush1.bf16.msra.mxu0 %v1523_v14  ;;  %1506 = vmatpush1.bf16.msra.mxu1 %v1523_v14 }
  0x2f   :  { %522 = vmatprep.subr.bf16.mxu0 %v1615_v0  ;;  %1491 = vmatprep.subr.bf16.mxu1 %v1615_v0 }
  0x32   :  { %523 = vmatpush1.bf16.msra.mxu0 %v1524_v15  ;;  %1507 = vmatpush1.bf16.msra.mxu1 %v1524_v15 }
  0x33   :  { %524 = vmatprep.subr.bf16.mxu0 %v1615_v0  ;;  %1492 = vmatprep.subr.bf16.mxu1 %v1615_v0 }
  0x36   :  { %525 = vmatpush1.bf16.msra.mxu0 %v1525_v16  ;;  %1508 = vmatpush1.bf16.msra.mxu1 %v1525_v16 }
  0x37   :  { %526 = vmatprep.subr.bf16.mxu0 %v1615_v0  ;;  %1493 = vmatprep.subr.bf16.mxu1 %v1615_v0 }
  0x3a   :  { %527 = vmatpush1.bf16.msra.mxu0 %v1526_v17  ;;  %1509 = vmatpush1.bf16.msra.mxu1 %v1526_v17 }
  0x3b   :  { %528 = vmatprep.subr.bf16.mxu0 %v1615_v0  ;;  %1494 = vmatprep.subr.bf16.mxu1 %v1615_v0  ;;  %v1599_v0 = vld [vmem:[%s2041_s0 + $0x1a0] ss:$8 sps:$4 sm:$0xff]  }
  0x3e   :  { %529 = vmatpush1.bf16.msra.mxu0 %v1527_v18  ;;  %1510 = vmatpush1.bf16.msra.mxu1 %v1527_v18 }
  0x41   :  { %531 = vmatmul.mubr.bf16.vlgmr.msra.gmra.mrb[0].mxu0 %v1528_v19  ;;  %651 = vmatmul.mubr.bf16.vlgmr.msra.gmra.mrb[0].mxu1 %v1531_v20 }
  0x42   :  { %538 = vmatprep.mubr.bf16.mxu0 %v1534_v21  ;;  %658 = vmatprep.mubr.bf16.mxu1 %v1537_v22 }
  0x49   :  { %539 = vmatmul.mubr.bf16.gmra.mrb[4].mxu0 %v1536_v23  ;;  %659 = vmatmul.mubr.bf16.gmra.mrb[4].mxu1 %v1539_v24 }
  0x4a   :  { %546 = vmatprep.mubr.bf16.mxu0 %v1540_v25  ;;  %666 = vmatprep.mubr.bf16.mxu1 %v1543_v26 }
  0x51   :  { %547 = vmatmul.mubr.bf16.gmra.mrb[8].mxu0 %v1542_v27  ;;  %667 = vmatmul.mubr.bf16.gmra.mrb[8].mxu1 %v1545_v28 }
  0x52   :  { %554 = vmatprep.mubr.bf16.mxu0 %v1546_v29  ;;  %674 = vmatprep.mubr.bf16.mxu1 %v1549_v30 }
  0x59   :  { %555 = vmatmul.mubr.bf16.gmra.mrb[12].mxu0 %v1548_v31  ;;  %675 = vmatmul.mubr.bf16.gmra.mrb[12].mxu1 %v1551_v32 }
  0x5a   :  { %562 = vmatprep.mubr.bf16.mxu0 %v1552_v33  ;;  %682 = vmatprep.mubr.bf16.mxu1 %v1555_v34 }
  0x61   :  { %563 = vmatmul.mubr.bf16.gmra.mrb[16].mxu0 %v1554_v35  ;;  %683 = vmatmul.mubr.bf16.gmra.mrb[16].mxu1 %v1557_v36 }
  0x62   :  { %570 = vmatprep.mubr.bf16.mxu0 %v1558_v37  ;;  %690 = vmatprep.mubr.bf16.mxu1 %v1561_v38 }
  0x69   :  { %571 = vmatmul.mubr.bf16.gmra.mrb[20].mxu0 %v1560_v39  ;;  %691 = vmatmul.mubr.bf16.gmra.mrb[20].mxu1 %v1563_v40 }
  0x6a   :  { %578 = vmatprep.mubr.bf16.mxu0 %v1564_v41  ;;  %698 = vmatprep.mubr.bf16.mxu1 %v1567_v42 }
  0x71   :  { %579 = vmatmul.mubr.bf16.gmra.mrb[24].mxu0 %v1566_v43  ;;  %699 = vmatmul.mubr.bf16.gmra.mrb[24].mxu1 %v1569_v44 }
  0x72   :  { %586 = vmatprep.mubr.bf16.mxu0 %v1570_v45  ;;  %706 = vmatprep.mubr.bf16.mxu1 %v1573_v46 }
  0x79   :  { %587 = vmatmul.mubr.bf16.gmra.mrb[28].mxu0 %v1572_v47  ;;  %707 = vmatmul.mubr.bf16.gmra.mrb[28].mxu1 %v1575_v48 }
  0x7a   :  { %594 = vmatprep.mubr.bf16.mxu0 %v1576_v49  ;;  %714 = vmatprep.mubr.bf16.mxu1 %v1579_v50 }
  0x81   :  { %595 = vmatmul.mubr.bf16.gmra.mrb[32].mxu0 %v1578_v51  ;;  %715 = vmatmul.mubr.bf16.gmra.mrb[32].mxu1 %v1581_v52 }
  0x82   :  { %602 = vmatprep.mubr.bf16.mxu0 %v1582_v53  ;;  %722 = vmatprep.mubr.bf16.mxu1 %v1585_v54 }
  0x89   :  { %603 = vmatmul.mubr.bf16.gmra.mrb[36].mxu0 %v1584_v55  ;;  %723 = vmatmul.mubr.bf16.gmra.mrb[36].mxu1 %v1587_v56 }
  0x8a   :  { %610 = vmatprep.mubr.bf16.mxu0 %v1588_v57  ;;  %730 = vmatprep.mubr.bf16.mxu1 %v1591_v58 }
  0x91   :  { %611 = vmatmul.mubr.bf16.gmra.mrb[40].mxu0 %v1590_v59  ;;  %731 = vmatmul.mubr.bf16.gmra.mrb[40].mxu1 %v1593_v60 }
  0x92   :  { %618 = vmatprep.mubr.bf16.mxu0 %v1594_v61  ;;  %738 = vmatprep.mubr.bf16.mxu1 %v1597_v62 }
  0x99   :  { %619 = vmatmul.mubr.bf16.gmra.mrb[44].mxu0 %v1596_v63  ;;  %739 = vmatmul.mubr.bf16.gmra.mrb[44].mxu1 %v1599_v0 }
  0x9a   :  { %626 = vmatprep.mubr.bf16.mxu0 %v1600_v1  ;;  %746 = vmatprep.mubr.bf16.mxu1 %v1603_v2 }
  0xa1   :  { %627 = vmatmul.mubr.bf16.gmra.mrb[48].mxu0 %v1602_v3  ;;  %747 = vmatmul.mubr.bf16.gmra.mrb[48].mxu1 %v1605_v4 }
  0xa2   :  { %634 = vmatprep.mubr.bf16.mxu0 %v1606_v5  ;;  %754 = vmatprep.mubr.bf16.mxu1 %v1609_v6 }
  0xa9   :  { %635 = vmatmul.mubr.bf16.gmra.mrb[52].mxu0 %v1608_v7  ;;  %755 = vmatmul.mubr.bf16.gmra.mrb[52].mxu1 %v1611_v8 }
  0xaa   :  { %642 = vmatprep.mubr.bf16.mxu0 %v1612_v9 }
  0xb1   :  { %643 = vmatmul.mubr.bf16.gmra.mrb[56].mxu0 %v1614_v10 }
 0x114   :  { %v532_v12 = vpop.f32.mrb[0].mxu0  ;;  %v652_v13 = vpop.f32.mrb[0].mxu1 }
 0x115   :  { %v533_v14 = vadd.f32 %v1893_v11, %v532_v12  ;;  %v534_v15 = vpop.f32.mrb[1].mxu0  ;;  %v653_v16 = vadd.f32 %v1893_v11, %v652_v13  ;;  %v654_v17 = vpop.f32.mrb[1].mxu1 }
 0x116   :  { %v535_v18 = vpop.f32.mrb[2].mxu0  ;;  %v655_v19 = vpop.f32.mrb[2].mxu1 }
 0x117   :  { %v536_v20 = vadd.f32 %v1893_v11, %v535_v18  ;;  %v537_v21 = vpop.f32.mrb[3].mxu0  ;;  %v793_v22 = vmax.f32 %v653_v16, 0.0  ;;  %v656_v23 = vadd.f32 %v1893_v11, %v655_v19  ;;  %v657_v24 = vpop.f32.mrb[3].mxu1  ;;  %v763_v25 = vmax.f32 %v533_v14, 0.0 }
 0x119   :  { %v764_v26 = vmax.f32 %v536_v20, 0.0  ;;  %v794_v27 = vmax.f32 %v656_v23, 0.0 }
 0x11b   :  { %v1309_v28 = vpack.c.bf16 %v764_v26, %v763_v25  ;;  %v1384_v29 = vpack.c.bf16 %v794_v27, %v793_v22 }
 0x11c   :  { %v540_v30 = vpop.f32.mrb[4].mxu0  ;;  %v660_v31 = vpop.f32.mrb[4].mxu1 }
 0x11d   :  { %1310 = vst [vmem:[%s2043_s3] sm:$0xff] %v1309_v28   ;;  %1465 = vst [vmem:[%s2043_s3 + $0x78] sm:$0xff] %v1384_v29   ;;  %v541_v32 = vadd.f32 %v1893_v11, %v540_v30  ;;  %v542_v33 = vpop.f32.mrb[5].mxu0  ;;  %v661_v34 = vadd.f32 %v1893_v11, %v660_v31  ;;  %v662_v35 = vpop.f32.mrb[5].mxu1 }
 0x11e   :  { %v543_v36 = vpop.f32.mrb[6].mxu0  ;;  %v663_v37 = vpop.f32.mrb[6].mxu1 }
 0x11f   :  { %v544_v38 = vadd.f32 %v1893_v11, %v543_v36  ;;  %v545_v39 = vpop.f32.mrb[7].mxu0  ;;  %v795_v40 = vmax.f32 %v661_v34, 0.0  ;;  %v664_v41 = vadd.f32 %v1893_v11, %v663_v37  ;;  %v665_v42 = vpop.f32.mrb[7].mxu1  ;;  %v765_v43 = vmax.f32 %v541_v32, 0.0 }
 0x121   :  { %v766_v44 = vmax.f32 %v544_v38, 0.0  ;;  %v796_v45 = vmax.f32 %v664_v41, 0.0 }
 0x123   :  { %v1314_v46 = vpack.c.bf16 %v766_v44, %v765_v43  ;;  %v1389_v47 = vpack.c.bf16 %v796_v45, %v795_v40 }
 0x124   :  { %v548_v48 = vpop.f32.mrb[8].mxu0  ;;  %v668_v49 = vpop.f32.mrb[8].mxu1 }
 0x125   :  { %1451 = vst [vmem:[%s2043_s3 + $0x8] sm:$0xff] %v1314_v46   ;;  %1466 = vst [vmem:[%s2043_s3 + $0x80] sm:$0xff] %v1389_v47   ;;  %v549_v50 = vadd.f32 %v1893_v11, %v548_v48  ;;  %v550_v51 = vpop.f32.mrb[9].mxu0  ;;  %v669_v52 = vadd.f32 %v1893_v11, %v668_v49  ;;  %v670_v53 = vpop.f32.mrb[9].mxu1 }
 0x126   :  { %v551_v54 = vpop.f32.mrb[10].mxu0  ;;  %v671_v55 = vpop.f32.mrb[10].mxu1 }
 0x127   :  { %v552_v56 = vadd.f32 %v1893_v11, %v551_v54  ;;  %v553_v57 = vpop.f32.mrb[11].mxu0  ;;  %v797_v58 = vmax.f32 %v669_v52, 0.0  ;;  %v672_v59 = vadd.f32 %v1893_v11, %v671_v55  ;;  %v673_v60 = vpop.f32.mrb[11].mxu1  ;;  %v767_v61 = vmax.f32 %v549_v50, 0.0 }
 0x129   :  { %v768_v62 = vmax.f32 %v552_v56, 0.0  ;;  %v798_v63 = vmax.f32 %v672_v59, 0.0 }
 0x12b   :  { %v1319_v0 = vpack.c.bf16 %v768_v62, %v767_v61  ;;  %v1394_v1 = vpack.c.bf16 %v798_v63, %v797_v58 }
 0x12c   :  { %v556_v2 = vpop.f32.mrb[12].mxu0  ;;  %v676_v3 = vpop.f32.mrb[12].mxu1 }
 0x12d   :  { %1452 = vst [vmem:[%s2043_s3 + $0x10] sm:$0xff] %v1319_v0   ;;  %1467 = vst [vmem:[%s2043_s3 + $0x88] sm:$0xff] %v1394_v1   ;;  %v557_v4 = vadd.f32 %v1893_v11, %v556_v2  ;;  %v558_v5 = vpop.f32.mrb[13].mxu0  ;;  %v677_v6 = vadd.f32 %v1893_v11, %v676_v3  ;;  %v678_v7 = vpop.f32.mrb[13].mxu1 }
 0x12e   :  { %v559_v8 = vpop.f32.mrb[14].mxu0  ;;  %v679_v9 = vpop.f32.mrb[14].mxu1 }
 0x12f   :  { %v560_v10 = vadd.f32 %v1893_v11, %v559_v8  ;;  %v561_v12 = vpop.f32.mrb[15].mxu0  ;;  %v799_v13 = vmax.f32 %v677_v6, 0.0  ;;  %v680_v14 = vadd.f32 %v1893_v11, %v679_v9  ;;  %v681_v15 = vpop.f32.mrb[15].mxu1  ;;  %v769_v16 = vmax.f32 %v557_v4, 0.0 }
 0x131   :  { %v770_v17 = vmax.f32 %v560_v10, 0.0  ;;  %v800_v18 = vmax.f32 %v680_v14, 0.0 }
 0x133   :  { %v1324_v19 = vpack.c.bf16 %v770_v17, %v769_v16  ;;  %v1399_v20 = vpack.c.bf16 %v800_v18, %v799_v13 }
 0x134   :  { %v564_v21 = vpop.f32.mrb[16].mxu0  ;;  %v684_v22 = vpop.f32.mrb[16].mxu1 }
 0x135   :  { %1453 = vst [vmem:[%s2043_s3 + $0x18] sm:$0xff] %v1324_v19   ;;  %1468 = vst [vmem:[%s2043_s3 + $0x90] sm:$0xff] %v1399_v20   ;;  %v565_v23 = vadd.f32 %v1893_v11, %v564_v21  ;;  %v566_v24 = vpop.f32.mrb[17].mxu0  ;;  %v685_v25 = vadd.f32 %v1893_v11, %v684_v22  ;;  %v686_v26 = vpop.f32.mrb[17].mxu1 }
 0x136   :  { %v567_v27 = vpop.f32.mrb[18].mxu0  ;;  %v687_v28 = vpop.f32.mrb[18].mxu1 }
 0x137   :  { %v568_v29 = vadd.f32 %v1893_v11, %v567_v27  ;;  %v569_v30 = vpop.f32.mrb[19].mxu0  ;;  %v801_v31 = vmax.f32 %v685_v25, 0.0  ;;  %v688_v32 = vadd.f32 %v1893_v11, %v687_v28  ;;  %v689_v33 = vpop.f32.mrb[19].mxu1  ;;  %v771_v34 = vmax.f32 %v565_v23, 0.0 }
 0x139   :  { %v772_v35 = vmax.f32 %v568_v29, 0.0  ;;  %v802_v36 = vmax.f32 %v688_v32, 0.0 }
 0x13b   :  { %v1329_v37 = vpack.c.bf16 %v772_v35, %v771_v34  ;;  %v1404_v38 = vpack.c.bf16 %v802_v36, %v801_v31 }
 0x13c   :  { %v572_v39 = vpop.f32.mrb[20].mxu0  ;;  %v692_v40 = vpop.f32.mrb[20].mxu1 }
 0x13d   :  { %1454 = vst [vmem:[%s2043_s3 + $0x20] sm:$0xff] %v1329_v37   ;;  %1469 = vst [vmem:[%s2043_s3 + $0x98] sm:$0xff] %v1404_v38   ;;  %v573_v41 = vadd.f32 %v1893_v11, %v572_v39  ;;  %v574_v42 = vpop.f32.mrb[21].mxu0  ;;  %v693_v43 = vadd.f32 %v1893_v11, %v692_v40  ;;  %v694_v44 = vpop.f32.mrb[21].mxu1 }
 0x13e   :  { %v575_v45 = vpop.f32.mrb[22].mxu0  ;;  %v695_v46 = vpop.f32.mrb[22].mxu1 }
 0x13f   :  { %v576_v47 = vadd.f32 %v1893_v11, %v575_v45  ;;  %v577_v48 = vpop.f32.mrb[23].mxu0  ;;  %v803_v49 = vmax.f32 %v693_v43, 0.0  ;;  %v696_v50 = vadd.f32 %v1893_v11, %v695_v46  ;;  %v697_v51 = vpop.f32.mrb[23].mxu1  ;;  %v773_v52 = vmax.f32 %v573_v41, 0.0 }
 0x141   :  { %v774_v53 = vmax.f32 %v576_v47, 0.0  ;;  %v804_v54 = vmax.f32 %v696_v50, 0.0 }
 0x143   :  { %v1334_v55 = vpack.c.bf16 %v774_v53, %v773_v52  ;;  %v1409_v56 = vpack.c.bf16 %v804_v54, %v803_v49 }
 0x144   :  { %v580_v57 = vpop.f32.mrb[24].mxu0  ;;  %v700_v58 = vpop.f32.mrb[24].mxu1 }
 0x145   :  { %1455 = vst [vmem:[%s2043_s3 + $0x28] sm:$0xff] %v1334_v55   ;;  %1470 = vst [vmem:[%s2043_s3 + $0xa0] sm:$0xff] %v1409_v56   ;;  %v581_v59 = vadd.f32 %v1893_v11, %v580_v57  ;;  %v582_v60 = vpop.f32.mrb[25].mxu0  ;;  %v701_v61 = vadd.f32 %v1893_v11, %v700_v58  ;;  %v702_v62 = vpop.f32.mrb[25].mxu1 }
 0x146   :  { %v583_v63 = vpop.f32.mrb[26].mxu0  ;;  %v703_v0 = vpop.f32.mrb[26].mxu1 }
 0x147   :  { %v584_v1 = vadd.f32 %v1893_v11, %v583_v63  ;;  %v585_v2 = vpop.f32.mrb[27].mxu0  ;;  %v805_v3 = vmax.f32 %v701_v61, 0.0  ;;  %v704_v4 = vadd.f32 %v1893_v11, %v703_v0  ;;  %v705_v5 = vpop.f32.mrb[27].mxu1  ;;  %v775_v6 = vmax.f32 %v581_v59, 0.0 }
 0x149   :  { %v776_v7 = vmax.f32 %v584_v1, 0.0  ;;  %v806_v8 = vmax.f32 %v704_v4, 0.0 }
 0x14b   :  { %v1339_v9 = vpack.c.bf16 %v776_v7, %v775_v6  ;;  %v1414_v10 = vpack.c.bf16 %v806_v8, %v805_v3 }
 0x14c   :  { %v588_v12 = vpop.f32.mrb[28].mxu0  ;;  %v708_v13 = vpop.f32.mrb[28].mxu1 }
 0x14d   :  { %1456 = vst [vmem:[%s2043_s3 + $0x30] sm:$0xff] %v1339_v9   ;;  %1471 = vst [vmem:[%s2043_s3 + $0xa8] sm:$0xff] %v1414_v10   ;;  %v589_v14 = vadd.f32 %v1893_v11, %v588_v12  ;;  %v590_v15 = vpop.f32.mrb[29].mxu0  ;;  %v709_v16 = vadd.f32 %v1893_v11, %v708_v13  ;;  %v710_v17 = vpop.f32.mrb[29].mxu1 }
 0x14e   :  { %v591_v18 = vpop.f32.mrb[30].mxu0  ;;  %v711_v19 = vpop.f32.mrb[30].mxu1 }
 0x14f   :  { %v592_v20 = vadd.f32 %v1893_v11, %v591_v18  ;;  %v593_v21 = vpop.f32.mrb[31].mxu0  ;;  %v807_v22 = vmax.f32 %v709_v16, 0.0  ;;  %v712_v23 = vadd.f32 %v1893_v11, %v711_v19  ;;  %v713_v24 = vpop.f32.mrb[31].mxu1  ;;  %v777_v25 = vmax.f32 %v589_v14, 0.0 }
 0x151   :  { %v778_v26 = vmax.f32 %v592_v20, 0.0  ;;  %v808_v27 = vmax.f32 %v712_v23, 0.0 }
 0x153   :  { %v1344_v28 = vpack.c.bf16 %v778_v26, %v777_v25  ;;  %v1419_v29 = vpack.c.bf16 %v808_v27, %v807_v22 }
 0x154   :  { %v596_v30 = vpop.f32.mrb[32].mxu0  ;;  %v716_v31 = vpop.f32.mrb[32].mxu1 }
 0x155   :  { %1457 = vst [vmem:[%s2043_s3 + $0x38] sm:$0xff] %v1344_v28   ;;  %1472 = vst [vmem:[%s2043_s3 + $0xb0] sm:$0xff] %v1419_v29   ;;  %v597_v32 = vadd.f32 %v1893_v11, %v596_v30  ;;  %v598_v33 = vpop.f32.mrb[33].mxu0  ;;  %v717_v34 = vadd.f32 %v1893_v11, %v716_v31  ;;  %v718_v35 = vpop.f32.mrb[33].mxu1 }
 0x156   :  { %v599_v36 = vpop.f32.mrb[34].mxu0  ;;  %v719_v37 = vpop.f32.mrb[34].mxu1 }
 0x157   :  { %v600_v38 = vadd.f32 %v1893_v11, %v599_v36  ;;  %v601_v39 = vpop.f32.mrb[35].mxu0  ;;  %v809_v40 = vmax.f32 %v717_v34, 0.0  ;;  %v720_v41 = vadd.f32 %v1893_v11, %v719_v37  ;;  %v721_v42 = vpop.f32.mrb[35].mxu1  ;;  %v779_v43 = vmax.f32 %v597_v32, 0.0 }
 0x159   :  { %v780_v44 = vmax.f32 %v600_v38, 0.0  ;;  %v810_v45 = vmax.f32 %v720_v41, 0.0 }
 0x15b   :  { %v1349_v46 = vpack.c.bf16 %v780_v44, %v779_v43  ;;  %v1424_v47 = vpack.c.bf16 %v810_v45, %v809_v40 }
 0x15c   :  { %v604_v48 = vpop.f32.mrb[36].mxu0  ;;  %v724_v49 = vpop.f32.mrb[36].mxu1 }
 0x15d   :  { %1458 = vst [vmem:[%s2043_s3 + $0x40] sm:$0xff] %v1349_v46   ;;  %1473 = vst [vmem:[%s2043_s3 + $0xb8] sm:$0xff] %v1424_v47   ;;  %v605_v50 = vadd.f32 %v1893_v11, %v604_v48  ;;  %v606_v51 = vpop.f32.mrb[37].mxu0  ;;  %v725_v52 = vadd.f32 %v1893_v11, %v724_v49  ;;  %v726_v53 = vpop.f32.mrb[37].mxu1 }
 0x15e   :  { %v607_v54 = vpop.f32.mrb[38].mxu0  ;;  %v727_v55 = vpop.f32.mrb[38].mxu1 }
 0x15f   :  { %v608_v56 = vadd.f32 %v1893_v11, %v607_v54  ;;  %v609_v57 = vpop.f32.mrb[39].mxu0  ;;  %v811_v58 = vmax.f32 %v725_v52, 0.0  ;;  %v728_v59 = vadd.f32 %v1893_v11, %v727_v55  ;;  %v729_v60 = vpop.f32.mrb[39].mxu1  ;;  %v781_v61 = vmax.f32 %v605_v50, 0.0 }
 0x161   :  { %v782_v62 = vmax.f32 %v608_v56, 0.0  ;;  %v812_v63 = vmax.f32 %v728_v59, 0.0 }
 0x163   :  { %v1354_v0 = vpack.c.bf16 %v782_v62, %v781_v61  ;;  %v1429_v1 = vpack.c.bf16 %v812_v63, %v811_v58 }
 0x164   :  { %v612_v2 = vpop.f32.mrb[40].mxu0  ;;  %v732_v3 = vpop.f32.mrb[40].mxu1 }
 0x165   :  { %1459 = vst [vmem:[%s2043_s3 + $0x48] sm:$0xff] %v1354_v0   ;;  %1474 = vst [vmem:[%s2043_s3 + $0xc0] sm:$0xff] %v1429_v1   ;;  %v613_v4 = vadd.f32 %v1893_v11, %v612_v2  ;;  %v614_v5 = vpop.f32.mrb[41].mxu0  ;;  %v733_v6 = vadd.f32 %v1893_v11, %v732_v3  ;;  %v734_v7 = vpop.f32.mrb[41].mxu1 }
 0x166   :  { %v615_v8 = vpop.f32.mrb[42].mxu0  ;;  %v735_v9 = vpop.f32.mrb[42].mxu1 }
 0x167   :  { %v616_v10 = vadd.f32 %v1893_v11, %v615_v8  ;;  %v617_v12 = vpop.f32.mrb[43].mxu0  ;;  %v813_v13 = vmax.f32 %v733_v6, 0.0  ;;  %v736_v14 = vadd.f32 %v1893_v11, %v735_v9  ;;  %v737_v15 = vpop.f32.mrb[43].mxu1  ;;  %v783_v16 = vmax.f32 %v613_v4, 0.0 }
 0x169   :  { %v784_v17 = vmax.f32 %v616_v10, 0.0  ;;  %v814_v18 = vmax.f32 %v736_v14, 0.0 }
 0x16b   :  { %v1359_v19 = vpack.c.bf16 %v784_v17, %v783_v16  ;;  %v1434_v20 = vpack.c.bf16 %v814_v18, %v813_v13 }
 0x16c   :  { %v620_v21 = vpop.f32.mrb[44].mxu0  ;;  %v740_v22 = vpop.f32.mrb[44].mxu1 }
 0x16d   :  { %1460 = vst [vmem:[%s2043_s3 + $0x50] sm:$0xff] %v1359_v19   ;;  %1475 = vst [vmem:[%s2043_s3 + $0xc8] sm:$0xff] %v1434_v20   ;;  %v621_v23 = vadd.f32 %v1893_v11, %v620_v21  ;;  %v622_v24 = vpop.f32.mrb[45].mxu0  ;;  %v741_v25 = vadd.f32 %v1893_v11, %v740_v22  ;;  %v742_v26 = vpop.f32.mrb[45].mxu1 }
 0x16e   :  { %v623_v27 = vpop.f32.mrb[46].mxu0  ;;  %v743_v28 = vpop.f32.mrb[46].mxu1 }
 0x16f   :  { %v624_v29 = vadd.f32 %v1893_v11, %v623_v27  ;;  %v625_v30 = vpop.f32.mrb[47].mxu0  ;;  %v815_v31 = vmax.f32 %v741_v25, 0.0  ;;  %v744_v32 = vadd.f32 %v1893_v11, %v743_v28  ;;  %v745_v33 = vpop.f32.mrb[47].mxu1  ;;  %v785_v34 = vmax.f32 %v621_v23, 0.0 }
 0x171   :  { %v786_v35 = vmax.f32 %v624_v29, 0.0  ;;  %v816_v36 = vmax.f32 %v744_v32, 0.0 }
 0x173   :  { %v1364_v37 = vpack.c.bf16 %v786_v35, %v785_v34  ;;  %v1439_v38 = vpack.c.bf16 %v816_v36, %v815_v31 }
 0x174   :  { %v628_v39 = vpop.f32.mrb[48].mxu0  ;;  %v748_v40 = vpop.f32.mrb[48].mxu1 }
 0x175   :  { %1461 = vst [vmem:[%s2043_s3 + $0x58] sm:$0xff] %v1364_v37   ;;  %1476 = vst [vmem:[%s2043_s3 + $0xd0] sm:$0xff] %v1439_v38   ;;  %v629_v41 = vadd.f32 %v1893_v11, %v628_v39  ;;  %v630_v42 = vpop.f32.mrb[49].mxu0  ;;  %v749_v43 = vadd.f32 %v1893_v11, %v748_v40  ;;  %v750_v44 = vpop.f32.mrb[49].mxu1 }
 0x176   :  { %v631_v45 = vpop.f32.mrb[50].mxu0  ;;  %v751_v46 = vpop.f32.mrb[50].mxu1 }
 0x177   :  { %v632_v47 = vadd.f32 %v1893_v11, %v631_v45  ;;  %v633_v48 = vpop.f32.mrb[51].mxu0  ;;  %v817_v49 = vmax.f32 %v749_v43, 0.0  ;;  %v752_v50 = vadd.f32 %v1893_v11, %v751_v46  ;;  %v753_v51 = vpop.f32.mrb[51].mxu1  ;;  %v787_v52 = vmax.f32 %v629_v41, 0.0 }
 0x179   :  { %v788_v53 = vmax.f32 %v632_v47, 0.0  ;;  %v818_v54 = vmax.f32 %v752_v50, 0.0 }
 0x17b   :  { %v1369_v55 = vpack.c.bf16 %v788_v53, %v787_v52  ;;  %v1444_v56 = vpack.c.bf16 %v818_v54, %v817_v49 }
 0x17c   :  { %v636_v57 = vpop.f32.mrb[52].mxu0  ;;  %v756_v58 = vpop.f32.mrb[52].mxu1 }
 0x17d   :  { %1462 = vst [vmem:[%s2043_s3 + $0x60] sm:$0xff] %v1369_v55   ;;  %1477 = vst [vmem:[%s2043_s3 + $0xd8] sm:$0xff] %v1444_v56   ;;  %v637_v59 = vadd.f32 %v1893_v11, %v636_v57  ;;  %v638_v60 = vpop.f32.mrb[53].mxu0  ;;  %v757_v61 = vadd.f32 %v1893_v11, %v756_v58  ;;  %v758_v62 = vpop.f32.mrb[53].mxu1 }
 0x17e   :  { %v639_v63 = vpop.f32.mrb[54].mxu0  ;;  %v759_v0 = vpop.f32.mrb[54].mxu1 }
 0x17f   :  { %v640_v1 = vadd.f32 %v1893_v11, %v639_v63  ;;  %v641_v2 = vpop.f32.mrb[55].mxu0  ;;  %v819_v3 = vmax.f32 %v757_v61, 0.0  ;;  %v760_v4 = vadd.f32 %v1893_v11, %v759_v0  ;;  %v761_v5 = vpop.f32.mrb[55].mxu1  ;;  %v789_v6 = vmax.f32 %v637_v59, 0.0 }
 0x181   :  { %v790_v7 = vmax.f32 %v640_v1, 0.0  ;;  %v820_v8 = vmax.f32 %v760_v4, 0.0 }
 0x183   :  { %v1374_v9 = vpack.c.bf16 %v790_v7, %v789_v6  ;;  %v1449_v10 = vpack.c.bf16 %v820_v8, %v819_v3 }
 0x184   :  { %v644_v12 = vpop.f32.mrb[56].mxu0 }
 0x185   :  { %1463 = vst [vmem:[%s2043_s3 + $0x68] sm:$0xff] %v1374_v9   ;;  %1478 = vst [vmem:[%s2043_s3 + $0xe0] sm:$0xff] %v1449_v10   ;;  %v645_v13 = vadd.f32 %v1893_v11, %v644_v12  ;;  %v646_v14 = vpop.f32.mrb[57].mxu0 }
 0x186   :  { %v647_v15 = vpop.f32.mrb[58].mxu0 }
 0x187   :  { %v648_v16 = vadd.f32 %v1893_v11, %v647_v15  ;;  %v649_v17 = vpop.f32.mrb[59].mxu0  ;;  %v791_v18 = vmax.f32 %v645_v13, 0.0 }
 0x189   :  { %v792_v19 = vmax.f32 %v648_v16, 0.0 }
 0x18b   :  { %v1379_v20 = vpack.c.bf16 %v792_v19, %v791_v18 }
 0x18d   :  { %1464 = vst [vmem:[%s2043_s3 + $0x70] sm:$0xff] %v1379_v20  }

// kernel: qnetwork_forward.5
= control target key start
LH: loop header
LB: loop body
LE: loop exit
PB: predicated region body
PF: predicated region fallthrough
CT: control target
= control target key end

     0   :  { %s1070_s1 = inlined_call_operand.vmem [shape: bf16[512,128], index: 1, kind: input, shape index: {}]   ;;  %s1071_s0 = inlined_call_operand.vmem [shape: bf16[80,512], index: 0, kind: input, shape index: {}]   ;;  %s1072_s2 = inlined_call_operand.vmem [shape: f32[1,128], index: 2, kind: input, shape index: {}]   ;;  %s1073_s3 = inlined_call_operand.vmem [shape: bf16[80,128], index: 3, kind: output, shape index: {}]  }
   0x1   :  { %v802_v0 = vld [vmem:[%s1070_s1 + $0x40] sm:$0xff]   ;;  %v806_v4 = vld [vmem:[%s1070_s1 + $0x48] sm:$0xff]   ;;  %v810_v8 = vld [vmem:[%s1070_s1 + $0x50] sm:$0xff]  }
   0x2   :  { %v803_v1 = vld [vmem:[%s1070_s1 + $0xc0] sm:$0xff]   ;;  %710 = vmatprep.subr.bf16.mxu0 %v802_v0  ;;  %v807_v5 = vld [vmem:[%s1070_s1 + $0xc8] sm:$0xff]   ;;  %v811_v9 = vld [vmem:[%s1070_s1 + $0xd0] sm:$0xff]  }
   0x3   :  { %v804_v2 = vld [vmem:[%s1070_s1] sm:$0xff]   ;;  %756 = vmatprep.subr.bf16.mxu1 %v803_v1  ;;  %v808_v6 = vld [vmem:[%s1070_s1 + $0x8] sm:$0xff]   ;;  %v812_v10 = vld [vmem:[%s1070_s1 + $0x10] sm:$0xff]  }
   0x4   :  { %v805_v3 = vld [vmem:[%s1070_s1 + $0x80] sm:$0xff]   ;;  %711 = vmatpush3.bf16.msra.mxu0 %v804_v2  ;;  %v809_v7 = vld [vmem:[%s1070_s1 + $0x88] sm:$0xff]   ;;  %v813_v11 = vld [vmem:[%s1070_s1 + $0x90] sm:$0xff]  }
   0x5   :  { %757 = vmatpush3.bf16.msra.mxu1 %v805_v3  ;;  %712 = vmatprep.subr.bf16.mxu0 %v806_v4  ;;  %v814_v12 = vld [vmem:[%s1070_s1 + $0x58] sm:$0xff]   ;;  %v818_v16 = vld [vmem:[%s1070_s1 + $0x60] sm:$0xff]   ;;  %v822_v20 = vld [vmem:[%s1070_s1 + $0x68] sm:$0xff]  }
   0x6   :  { %758 = vmatprep.subr.bf16.mxu1 %v807_v5  ;;  %v815_v13 = vld [vmem:[%s1070_s1 + $0xd8] sm:$0xff]   ;;  %v819_v17 = vld [vmem:[%s1070_s1 + $0xe0] sm:$0xff]   ;;  %v823_v21 = vld [vmem:[%s1070_s1 + $0xe8] sm:$0xff]  }
   0x7   :  { %v816_v14 = vld [vmem:[%s1070_s1 + $0x18] sm:$0xff]   ;;  %v820_v18 = vld [vmem:[%s1070_s1 + $0x20] sm:$0xff]   ;;  %v824_v22 = vld [vmem:[%s1070_s1 + $0x28] sm:$0xff]  }
   0x8   :  { %713 = vmatpush3.bf16.msra.mxu0 %v808_v6  ;;  %v817_v15 = vld [vmem:[%s1070_s1 + $0x98] sm:$0xff]   ;;  %v821_v19 = vld [vmem:[%s1070_s1 + $0xa0] sm:$0xff]   ;;  %v825_v23 = vld [vmem:[%s1070_s1 + $0xa8] sm:$0xff]  }
   0x9   :  { %759 = vmatpush3.bf16.msra.mxu1 %v809_v7  ;;  %714 = vmatprep.subr.bf16.mxu0 %v810_v8  ;;  %v826_v24 = vld [vmem:[%s1070_s1 + $0x70] sm:$0xff]   ;;  %v830_v28 = vld [vmem:[%s1070_s1 + $0x78] sm:$0xff]   ;;  %v1043_v54 = vld [vmem:[%s1072_s2] ss:$0 sm:$0xff] }
   0xa   :  { %760 = vmatprep.subr.bf16.mxu1 %v811_v9  ;;  %v827_v25 = vld [vmem:[%s1070_s1 + $0xf0] sm:$0xff]   ;;  %v831_v29 = vld [vmem:[%s1070_s1 + $0xf8] sm:$0xff]  }
   0xb   :  { %v828_v26 = vld [vmem:[%s1070_s1 + $0x30] sm:$0xff]   ;;  %v832_v30 = vld [vmem:[%s1070_s1 + $0x38] sm:$0xff]  }
   0xc   :  { %715 = vmatpush3.bf16.msra.mxu0 %v812_v10  ;;  %v829_v27 = vld [vmem:[%s1070_s1 + $0xb0] sm:$0xff]   ;;  %v833_v31 = vld [vmem:[%s1070_s1 + $0xb8] sm:$0xff]  }
   0xd   :  { %761 = vmatpush3.bf16.msra.mxu1 %v813_v11  ;;  %716 = vmatprep.subr.bf16.mxu0 %v814_v12  ;;  %v834_v32 = vld [vmem:[%s1071_s0] ss:$16 sps:$4 sm:$0xff]   ;;  %v836_v33 = vld [vmem:[%s1071_s0 + $0x4] ss:$16 sps:$4 sm:$0xff]   ;;  %v837_v34 = vld [vmem:[%s1071_s0 + $0x8] ss:$16 sps:$4 sm:$0xff]  }
   0xe   :  { %762 = vmatprep.subr.bf16.mxu1 %v815_v13  ;;  %v839_v35 = vld [vmem:[%s1071_s0 + $0xc] ss:$16 sps:$4 sm:$0xff]   ;;  %430 = vmatprep.mubr.bf16.mxu0 %v836_v33  ;;  %v840_v36 = vld [vmem:[%s1071_s0 + $0x24] ss:$16 sps:$4 sm:$0xff]   ;;  %v844_v38 = vld [vmem:[%s1071_s0 + $0x20] ss:$16 sps:$4 sm:$0xff]  }
   0xf   :  { %503 = vmatprep.mubr.bf16.mxu1 %v839_v35  ;;  %v842_v37 = vld [vmem:[%s1071_s0 + $0x2c] ss:$16 sps:$4 sm:$0xff]   ;;  %v845_v39 = vld [vmem:[%s1071_s0 + $0x28] ss:$16 sps:$4 sm:$0xff]   ;;  %v846_v40 = vld [vmem:[%s1071_s0 + $0x44] ss:$16 sps:$4 sm:$0xff]  }
  0x10   :  { %717 = vmatpush3.bf16.msra.mxu0 %v816_v14  ;;  %v848_v41 = vld [vmem:[%s1071_s0 + $0x4c] ss:$16 sps:$4 sm:$0xff]   ;;  %v850_v42 = vld [vmem:[%s1071_s0 + $0x40] ss:$16 sps:$4 sm:$0xff]   ;;  %v851_v43 = vld [vmem:[%s1071_s0 + $0x48] ss:$16 sps:$4 sm:$0xff]  }
  0x11   :  { %763 = vmatpush3.bf16.msra.mxu1 %v817_v15  ;;  %718 = vmatprep.subr.bf16.mxu0 %v818_v16  ;;  %v852_v44 = vld [vmem:[%s1071_s0 + $0x64] ss:$16 sps:$4 sm:$0xff]   ;;  %v854_v45 = vld [vmem:[%s1071_s0 + $0x6c] ss:$16 sps:$4 sm:$0xff]   ;;  %v856_v46 = vld [vmem:[%s1071_s0 + $0x60] ss:$16 sps:$4 sm:$0xff]  }
  0x12   :  { %764 = vmatprep.subr.bf16.mxu1 %v819_v17  ;;  %v857_v47 = vld [vmem:[%s1071_s0 + $0x68] ss:$16 sps:$4 sm:$0xff]   ;;  %v858_v48 = vld [vmem:[%s1071_s0 + $0x84] ss:$16 sps:$4 sm:$0xff]   ;;  %v860_v49 = vld [vmem:[%s1071_s0 + $0x8c] ss:$16 sps:$4 sm:$0xff]  }
  0x13   :  { %v862_v50 = vld [vmem:[%s1071_s0 + $0x80] ss:$16 sps:$4 sm:$0xff]   ;;  %v863_v51 = vld [vmem:[%s1071_s0 + $0x88] ss:$16 sps:$4 sm:$0xff]  }
  0x14   :  { %719 = vmatpush3.bf16.msra.mxu0 %v820_v18 }
  0x15   :  { %765 = vmatpush3.bf16.msra.mxu1 %v821_v19  ;;  %720 = vmatprep.subr.bf16.mxu0 %v822_v20 }
  0x16   :  { %766 = vmatprep.subr.bf16.mxu1 %v823_v21 }
  0x18   :  { %721 = vmatpush3.bf16.msra.mxu0 %v824_v22 }
  0x19   :  { %767 = vmatpush3.bf16.msra.mxu1 %v825_v23  ;;  %722 = vmatprep.subr.bf16.mxu0 %v826_v24 }
  0x1a   :  { %768 = vmatprep.subr.bf16.mxu1 %v827_v25 }
  0x1c   :  { %723 = vmatpush3.bf16.msra.mxu0 %v828_v26 }
  0x1d   :  { %769 = vmatpush3.bf16.msra.mxu1 %v829_v27  ;;  %724 = vmatprep.subr.bf16.mxu0 %v830_v28 }
  0x1e   :  { %770 = vmatprep.subr.bf16.mxu1 %v831_v29 }
  0x20   :  { %725 = vmatpush3.bf16.msra.mxu0 %v832_v30 }
  0x21   :  { %771 = vmatpush3.bf16.msra.mxu1 %v833_v31 }
  0x23   :  { %431 = vmatmul.mubr.bf16.vlgmr.msra.gmra.mrb[0].mxu0 %v834_v32 }
  0x24   :  { %504 = vmatmul.mubr.bf16.vlgmr.msra.gmra.mrb[0].mxu1 %v837_v34  ;;  %438 = vmatprep.mubr.bf16.mxu0 %v840_v36 }
  0x25   :  { %511 = vmatprep.mubr.bf16.mxu1 %v842_v37 }
  0x2b   :  { %439 = vmatmul.mubr.bf16.gmra.mrb[4].mxu0 %v844_v38 }
  0x2c   :  { %512 = vmatmul.mubr.bf16.gmra.mrb[4].mxu1 %v845_v39  ;;  %446 = vmatprep.mubr.bf16.mxu0 %v846_v40 }
  0x2d   :  { %519 = vmatprep.mubr.bf16.mxu1 %v848_v41 }
  0x33   :  { %447 = vmatmul.mubr.bf16.gmra.mrb[8].mxu0 %v850_v42 }
  0x34   :  { %520 = vmatmul.mubr.bf16.gmra.mrb[8].mxu1 %v851_v43  ;;  %454 = vmatprep.mubr.bf16.mxu0 %v852_v44 }
  0x35   :  { %527 = vmatprep.mubr.bf16.mxu1 %v854_v45 }
  0x3b   :  { %455 = vmatmul.mubr.bf16.gmra.mrb[12].mxu0 %v856_v46 }
  0x3c   :  { %528 = vmatmul.mubr.bf16.gmra.mrb[12].mxu1 %v857_v47  ;;  %462 = vmatprep.mubr.bf16.mxu0 %v858_v48 }
  0x3d   :  { %535 = vmatprep.mubr.bf16.mxu1 %v860_v49 }
  0x43   :  { %463 = vmatmul.mubr.bf16.gmra.mrb[16].mxu0 %v862_v50 }
  0x44   :  { %536 = vmatmul.mubr.bf16.gmra.mrb[16].mxu1 %v863_v51 }
  0xf6   :  { %v726_v52 = vpop.f32.mrb[0].mxu0 }
  0xf7   :  { %v772_v53 = vpop.f32.mrb[0].mxu1  ;;  %v727_v55 = vpop.f32.mrb[1].mxu0 }
  0xf8   :  { %v728_v56 = vadd.f32 %v727_v55, %v726_v52  ;;  %v773_v57 = vpop.f32.mrb[1].mxu1  ;;  %v729_v58 = vpop.f32.mrb[2].mxu0 }
  0xf9   :  { %v774_v59 = vadd.f32 %v773_v57, %v772_v53  ;;  %v775_v60 = vpop.f32.mrb[2].mxu1  ;;  %v730_v61 = vpop.f32.mrb[3].mxu0 }
  0xfa   :  { %v433_v62 = vadd.f32 %v728_v56, %v1043_v54  ;;  %v731_v63 = vadd.f32 %v730_v61, %v729_v58  ;;  %v776_v0 = vpop.f32.mrb[3].mxu1 }
  0xfb   :  { %v777_v1 = vadd.f32 %v776_v0, %v775_v60 }
  0xfc   :  { %v506_v2 = vadd.f32 %v774_v59, %v433_v62  ;;  %v436_v3 = vadd.f32 %v731_v63, %v1043_v54 }
  0xfe   :  { %v509_v4 = vadd.f32 %v777_v1, %v436_v3  ;;  %v732_v5 = vpop.f32.mrb[4].mxu0  ;;  %v544_v8 = vmax.f32 %v506_v2, 0.0 }
  0xff   :  { %v778_v6 = vpop.f32.mrb[4].mxu1  ;;  %v733_v7 = vpop.f32.mrb[5].mxu0 }
 0x100   :  { %v545_v9 = vmax.f32 %v509_v4, 0.0  ;;  %v734_v10 = vadd.f32 %v733_v7, %v732_v5  ;;  %v779_v11 = vpop.f32.mrb[5].mxu1  ;;  %v735_v12 = vpop.f32.mrb[6].mxu0 }
 0x101   :  { %v780_v13 = vadd.f32 %v779_v11, %v778_v6  ;;  %v781_v14 = vpop.f32.mrb[6].mxu1  ;;  %v736_v15 = vpop.f32.mrb[7].mxu0 }
 0x102   :  { %v684_v16 = vpack.c.bf16 %v545_v9, %v544_v8  ;;  %v441_v17 = vadd.f32 %v734_v10, %v1043_v54  ;;  %v737_v18 = vadd.f32 %v736_v15, %v735_v12  ;;  %v782_v19 = vpop.f32.mrb[7].mxu1 }
 0x103   :  { %v783_v20 = vadd.f32 %v782_v19, %v781_v14 }
 0x104   :  { %685 = vst [vmem:[%s1073_s3] sm:$0xff] %v684_v16   ;;  %v514_v21 = vadd.f32 %v780_v13, %v441_v17  ;;  %v444_v22 = vadd.f32 %v737_v18, %v1043_v54 }
 0x106   :  { %v517_v23 = vadd.f32 %v783_v20, %v444_v22  ;;  %v738_v24 = vpop.f32.mrb[8].mxu0  ;;  %v546_v27 = vmax.f32 %v514_v21, 0.0 }
 0x107   :  { %v784_v25 = vpop.f32.mrb[8].mxu1  ;;  %v739_v26 = vpop.f32.mrb[9].mxu0 }
 0x108   :  { %v547_v28 = vmax.f32 %v517_v23, 0.0  ;;  %v740_v29 = vadd.f32 %v739_v26, %v738_v24  ;;  %v785_v30 = vpop.f32.mrb[9].mxu1  ;;  %v741_v31 = vpop.f32.mrb[10].mxu0 }
 0x109   :  { %v786_v32 = vadd.f32 %v785_v30, %v784_v25  ;;  %v787_v33 = vpop.f32.mrb[10].mxu1  ;;  %v742_v34 = vpop.f32.mrb[11].mxu0 }
 0x10a   :  { %v689_v35 = vpack.c.bf16 %v547_v28, %v546_v27  ;;  %v449_v36 = vadd.f32 %v740_v29, %v1043_v54  ;;  %v743_v37 = vadd.f32 %v742_v34, %v741_v31  ;;  %v788_v38 = vpop.f32.mrb[11].mxu1 }
 0x10b   :  { %v789_v39 = vadd.f32 %v788_v38, %v787_v33 }
 0x10c   :  { %706 = vst [vmem:[%s1073_s3 + $0x8] sm:$0xff] %v689_v35   ;;  %v522_v40 = vadd.f32 %v786_v32, %v449_v36  ;;  %v452_v41 = vadd.f32 %v743_v37, %v1043_v54 }
 0x10e   :  { %v525_v42 = vadd.f32 %v789_v39, %v452_v41  ;;  %v744_v43 = vpop.f32.mrb[12].mxu0  ;;  %v548_v46 = vmax.f32 %v522_v40, 0.0 }
 0x10f   :  { %v790_v44 = vpop.f32.mrb[12].mxu1  ;;  %v745_v45 = vpop.f32.mrb[13].mxu0 }
 0x110   :  { %v549_v47 = vmax.f32 %v525_v42, 0.0  ;;  %v746_v48 = vadd.f32 %v745_v45, %v744_v43  ;;  %v791_v49 = vpop.f32.mrb[13].mxu1  ;;  %v747_v50 = vpop.f32.mrb[14].mxu0 }
 0x111   :  { %v792_v51 = vadd.f32 %v791_v49, %v790_v44  ;;  %v793_v52 = vpop.f32.mrb[14].mxu1  ;;  %v748_v53 = vpop.f32.mrb[15].mxu0 }
 0x112   :  { %v694_v55 = vpack.c.bf16 %v549_v47, %v548_v46  ;;  %v457_v56 = vadd.f32 %v746_v48, %v1043_v54  ;;  %v749_v57 = vadd.f32 %v748_v53, %v747_v50  ;;  %v794_v58 = vpop.f32.mrb[15].mxu1 }
 0x113   :  { %v795_v59 = vadd.f32 %v794_v58, %v793_v52 }
 0x114   :  { %707 = vst [vmem:[%s1073_s3 + $0x10] sm:$0xff] %v694_v55   ;;  %v530_v60 = vadd.f32 %v792_v51, %v457_v56  ;;  %v460_v61 = vadd.f32 %v749_v57, %v1043_v54 }
 0x116   :  { %v533_v62 = vadd.f32 %v795_v59, %v460_v61  ;;  %v750_v63 = vpop.f32.mrb[16].mxu0  ;;  %v550_v2 = vmax.f32 %v530_v60, 0.0 }
 0x117   :  { %v796_v0 = vpop.f32.mrb[16].mxu1  ;;  %v751_v1 = vpop.f32.mrb[17].mxu0 }
 0x118   :  { %v551_v3 = vmax.f32 %v533_v62, 0.0  ;;  %v752_v4 = vadd.f32 %v751_v1, %v750_v63  ;;  %v797_v5 = vpop.f32.mrb[17].mxu1  ;;  %v753_v6 = vpop.f32.mrb[18].mxu0 }
 0x119   :  { %v798_v7 = vadd.f32 %v797_v5, %v796_v0  ;;  %v799_v8 = vpop.f32.mrb[18].mxu1  ;;  %v754_v9 = vpop.f32.mrb[19].mxu0 }
 0x11a   :  { %v699_v10 = vpack.c.bf16 %v551_v3, %v550_v2  ;;  %v465_v11 = vadd.f32 %v752_v4, %v1043_v54  ;;  %v755_v12 = vadd.f32 %v754_v9, %v753_v6  ;;  %v800_v13 = vpop.f32.mrb[19].mxu1 }
 0x11b   :  { %v801_v14 = vadd.f32 %v800_v13, %v799_v8 }
 0x11c   :  { %708 = vst [vmem:[%s1073_s3 + $0x18] sm:$0xff] %v699_v10   ;;  %v538_v15 = vadd.f32 %v798_v7, %v465_v11  ;;  %v468_v16 = vadd.f32 %v755_v12, %v1043_v54 }
 0x11e   :  { %v541_v17 = vadd.f32 %v801_v14, %v468_v16  ;;  %v552_v18 = vmax.f32 %v538_v15, 0.0 }
 0x120   :  { %v553_v19 = vmax.f32 %v541_v17, 0.0 }
 0x122   :  { %v704_v20 = vpack.c.bf16 %v553_v19, %v552_v18 }
 0x124   :  { %709 = vst [vmem:[%s1073_s3 + $0x20] sm:$0xff] %v704_v20  }

// kernel: qnetwork_forward.6
= control target key start
LH: loop header
LB: loop body
LE: loop exit
PB: predicated region body
PF: predicated region fallthrough
CT: control target
= control target key end

     0   :  { %s970_s1 = inlined_call_operand.vmem [shape: bf16[640,128], index: 1, kind: input, shape index: {}]   ;;  %s971_s0 = inlined_call_operand.vmem [shape: bf16[32,640], index: 0, kind: input, shape index: {}]   ;;  %s972_s2 = inlined_call_operand.vmem [shape: f32[1,128], index: 2, kind: input, shape index: {}]   ;;  %s973_s3 = inlined_call_operand.vmem [shape: bf16[32,128], index: 3, kind: output, shape index: {}]  }
   0x1   :  { %v737_v0 = vld [vmem:[%s970_s1 + $0x40] sm:$0xff]   ;;  %v741_v4 = vld [vmem:[%s970_s1 + $0x48] sm:$0xff]   ;;  %v745_v8 = vld [vmem:[%s970_s1 + $0x50] sm:$0xff]  }
   0x2   :  { %v738_v1 = vld [vmem:[%s970_s1] sm:$0xff]   ;;  %651 = vmatprep.subr.bf16.mxu0 %v737_v0  ;;  %v742_v5 = vld [vmem:[%s970_s1 + $0x8] sm:$0xff]   ;;  %v746_v9 = vld [vmem:[%s970_s1 + $0x10] sm:$0xff]  }
   0x3   :  { %v739_v2 = vld [vmem:[%s970_s1 + $0xc0] sm:$0xff]   ;;  %652 = vmatpush3.bf16.msra.mxu0 %v738_v1  ;;  %v743_v6 = vld [vmem:[%s970_s1 + $0xc8] sm:$0xff]   ;;  %v747_v10 = vld [vmem:[%s970_s1 + $0xd0] sm:$0xff]  }
   0x4   :  { %v740_v3 = vld [vmem:[%s970_s1 + $0x80] sm:$0xff]   ;;  %679 = vmatprep.subr.bf16.mxu1 %v739_v2  ;;  %653 = vmatprep.subr.bf16.mxu0 %v741_v4  ;;  %v744_v7 = vld [vmem:[%s970_s1 + $0x88] sm:$0xff]   ;;  %v748_v11 = vld [vmem:[%s970_s1 + $0x90] sm:$0xff]  }
   0x5   :  { %680 = vmatpush3.bf16.msra.mxu1 %v740_v3  ;;  %v749_v12 = vld [vmem:[%s970_s1 + $0x58] sm:$0xff]   ;;  %v753_v16 = vld [vmem:[%s970_s1 + $0x60] sm:$0xff]   ;;  %v757_v20 = vld [vmem:[%s970_s1 + $0x68] sm:$0xff]  }
   0x6   :  { %681 = vmatprep.subr.bf16.mxu1 %v743_v6  ;;  %v750_v13 = vld [vmem:[%s970_s1 + $0x18] sm:$0xff]   ;;  %v754_v17 = vld [vmem:[%s970_s1 + $0x20] sm:$0xff]   ;;  %v758_v21 = vld [vmem:[%s970_s1 + $0x28] sm:$0xff]  }
   0x7   :  { %654 = vmatpush3.bf16.msra.mxu0 %v742_v5  ;;  %v751_v14 = vld [vmem:[%s970_s1 + $0xd8] sm:$0xff]   ;;  %v755_v18 = vld [vmem:[%s970_s1 + $0xe0] sm:$0xff]   ;;  %v759_v22 = vld [vmem:[%s970_s1 + $0xe8] sm:$0xff]  }
   0x8   :  { %655 = vmatprep.subr.bf16.mxu0 %v745_v8  ;;  %v752_v15 = vld [vmem:[%s970_s1 + $0x98] sm:$0xff]   ;;  %v756_v19 = vld [vmem:[%s970_s1 + $0xa0] sm:$0xff]   ;;  %v760_v23 = vld [vmem:[%s970_s1 + $0xa8] sm:$0xff]  }
   0x9   :  { %682 = vmatpush3.bf16.msra.mxu1 %v744_v7  ;;  %v761_v24 = vld [vmem:[%s970_s1 + $0x70] sm:$0xff]   ;;  %v765_v28 = vld [vmem:[%s970_s1 + $0x78] sm:$0xff]   ;;  %v772_v34 = vld [vmem:[%s970_s1 + $0x100] sm:$0xff]  }
   0xa   :  { %683 = vmatprep.subr.bf16.mxu1 %v747_v10  ;;  %v762_v25 = vld [vmem:[%s970_s1 + $0x30] sm:$0xff]   ;;  %v766_v29 = vld [vmem:[%s970_s1 + $0x38] sm:$0xff]   ;;  %v775_v36 = vld [vmem:[%s971_s0 + $0xc] ss:$20 sps:$4 sm:$0xff]  }
   0xb   :  { %656 = vmatpush3.bf16.msra.mxu0 %v746_v9  ;;  %v763_v26 = vld [vmem:[%s970_s1 + $0xf0] sm:$0xff]   ;;  %v767_v30 = vld [vmem:[%s970_s1 + $0xf8] sm:$0xff]   ;;  %v776_v37 = vld [vmem:[%s970_s1 + $0x108] sm:$0xff]   ;;  %487 = vmatprep.mubr.bf16.mxu1 %v775_v36 }
   0xc   :  { %657 = vmatprep.subr.bf16.mxu0 %v749_v12  ;;  %v764_v27 = vld [vmem:[%s970_s1 + $0xb0] sm:$0xff]   ;;  %v770_v32 = vld [vmem:[%s971_s0 + $0x4] ss:$20 sps:$4 sm:$0xff]   ;;  %v773_v35 = vld [vmem:[%s971_s0 + $0x8] ss:$20 sps:$4 sm:$0xff]  }
   0xd   :  { %684 = vmatpush3.bf16.msra.mxu1 %v748_v11  ;;  %v768_v31 = vld [vmem:[%s971_s0] ss:$20 sps:$4 sm:$0xff]   ;;  %v771_v33 = vld [vmem:[%s970_s1 + $0xb8] sm:$0xff]   ;;  %438 = vmatprep.mubr.bf16.mxu0 %v770_v32  ;;  %v786_v43 = vld [vmem:[%s971_s0 + $0x30] ss:$20 sps:$4 sm:$0xff]  }
   0xe   :  { %685 = vmatprep.subr.bf16.mxu1 %v751_v14  ;;  %v777_v38 = vld [vmem:[%s970_s1 + $0x110] sm:$0xff]   ;;  %v780_v39 = vld [vmem:[%s971_s0 + $0x2c] ss:$20 sps:$4 sm:$0xff]   ;;  %v778_v40 = vld [vmem:[%s970_s1 + $0x118] sm:$0xff]  }
   0xf   :  { %658 = vmatpush3.bf16.msra.mxu0 %v750_v13  ;;  %v783_v41 = vld [vmem:[%s971_s0 + $0x28] ss:$20 sps:$4 sm:$0xff]   ;;  %v779_v44 = vld [vmem:[%s970_s1 + $0x120] sm:$0xff]   ;;  %v787_v47 = vld [vmem:[%s970_s1 + $0x130] sm:$0xff]  }
  0x10   :  { %659 = vmatprep.subr.bf16.mxu0 %v753_v16  ;;  %v784_v42 = vld [vmem:[%s971_s0 + $0x34] ss:$20 sps:$4 sm:$0xff]   ;;  %v789_v45 = vld [vmem:[%s971_s0 + $0x10] ss:$20 sps:$4 sm:$0xff]   ;;  %v788_v48 = vld [vmem:[%s970_s1 + $0x138] sm:$0xff]  }
  0x11   :  { %686 = vmatpush3.bf16.msra.mxu1 %v752_v15  ;;  %v782_v46 = vld [vmem:[%s970_s1 + $0x128] sm:$0xff]   ;;  %v581_v51 = vld [vmem:[%s972_s2] ss:$0 sm:$0xff] }
  0x12   :  { %687 = vmatprep.subr.bf16.mxu1 %v755_v18  ;;  %v790_v49 = vld [vmem:[%s971_s0 + $0x38] ss:$20 sps:$4 sm:$0xff]  }
  0x13   :  { %660 = vmatpush3.bf16.msra.mxu0 %v754_v17 }
  0x14   :  { %661 = vmatprep.subr.bf16.mxu0 %v757_v20 }
  0x15   :  { %688 = vmatpush3.bf16.msra.mxu1 %v756_v19 }
  0x16   :  { %689 = vmatprep.subr.bf16.mxu1 %v759_v22 }
  0x17   :  { %662 = vmatpush3.bf16.msra.mxu0 %v758_v21 }
  0x18   :  { %663 = vmatprep.subr.bf16.mxu0 %v761_v24 }
  0x19   :  { %690 = vmatpush3.bf16.msra.mxu1 %v760_v23 }
  0x1a   :  { %691 = vmatprep.subr.bf16.mxu1 %v763_v26 }
  0x1b   :  { %664 = vmatpush3.bf16.msra.mxu0 %v762_v25 }
  0x1c   :  { %665 = vmatprep.subr.bf16.mxu0 %v765_v28 }
  0x1d   :  { %692 = vmatpush3.bf16.msra.mxu1 %v764_v27 }
  0x1e   :  { %693 = vmatprep.subr.bf16.mxu1 %v767_v30 }
  0x1f   :  { %666 = vmatpush3.bf16.msra.mxu0 %v766_v29 }
  0x20   :  { %717 = vmatprep.subr.bf16.mxu0 %v772_v34 }
  0x21   :  { %694 = vmatpush3.bf16.msra.mxu1 %v771_v33 }
  0x22   :  { %439 = vmatmul.mubr.bf16.vlgmr.msra.gmra.mrb[0].mxu0 %v768_v31 }
  0x23   :  { %718 = vmatpush3.bf16.msra.mxu0 %v772_v34  ;;  %446 = vmatprep.mubr.bf16.mxu0 %v780_v39 }
  0x24   :  { %488 = vmatmul.mubr.bf16.vlgmr.msra.gmra.mrb[0].mxu1 %v773_v35  ;;  %719 = vmatprep.subr.bf16.mxu0 %v776_v37 }
  0x25   :  { %495 = vmatprep.mubr.bf16.mxu1 %v784_v42 }
  0x27   :  { %720 = vmatpush3.bf16.msra.mxu0 %v776_v37 }
  0x28   :  { %721 = vmatprep.subr.bf16.mxu0 %v777_v38 }
  0x2a   :  { %447 = vmatmul.mubr.bf16.gmra.mrb[4].mxu0 %v783_v41 }
  0x2b   :  { %722 = vmatpush3.bf16.msra.mxu0 %v777_v38  ;;  %733 = vmatprep.mubr.bf16.mxu0 %v789_v45 }
  0x2c   :  { %723 = vmatprep.subr.bf16.mxu0 %v778_v40  ;;  %496 = vmatmul.mubr.bf16.gmra.mrb[4].mxu1 %v786_v43 }
  0x2f   :  { %724 = vmatpush3.bf16.msra.mxu0 %v778_v40 }
  0x30   :  { %725 = vmatprep.subr.bf16.mxu0 %v779_v44 }
  0x33   :  { %726 = vmatpush3.bf16.msra.mxu0 %v779_v44 }
  0x34   :  { %727 = vmatprep.subr.bf16.mxu0 %v782_v46 }
  0x37   :  { %728 = vmatpush3.bf16.msra.mxu0 %v782_v46 }
  0x38   :  { %729 = vmatprep.subr.bf16.mxu0 %v787_v47 }
  0x3b   :  { %730 = vmatpush3.bf16.msra.mxu0 %v787_v47 }
  0x3c   :  { %731 = vmatprep.subr.bf16.mxu0 %v788_v48 }
  0x3f   :  { %732 = vmatpush3.bf16.msra.mxu0 %v788_v48 }
  0x42   :  { %734 = vmatmul.mubr.bf16.vlgmr.msra.gmra.mrb[8].mxu0 %v790_v49 }
  0xf5   :  { %v667_v50 = vpop.f32.mrb[0].mxu0 }
  0xf6   :  { %v668_v52 = vpop.f32.mrb[1].mxu0 }
  0xf7   :  { %v669_v53 = vadd.f32 %v668_v52, %v667_v50  ;;  %v670_v54 = vpop.f32.mrb[2].mxu0  ;;  %v695_v55 = vpop.f32.mrb[0].mxu1 }
  0xf8   :  { %v671_v56 = vpop.f32.mrb[3].mxu0  ;;  %v696_v59 = vpop.f32.mrb[1].mxu1 }
  0xf9   :  { %v441_v57 = vadd.f32 %v669_v53, %v581_v51  ;;  %v672_v58 = vadd.f32 %v671_v56, %v670_v54  ;;  %v697_v60 = vadd.f32 %v696_v59, %v695_v55  ;;  %v698_v61 = vpop.f32.mrb[2].mxu1 }
  0xfa   :  { %v699_v63 = vpop.f32.mrb[3].mxu1 }
  0xfb   :  { %v444_v62 = vadd.f32 %v672_v58, %v581_v51  ;;  %v700_v0 = vadd.f32 %v699_v63, %v698_v61  ;;  %v490_v1 = vadd.f32 %v697_v60, %v441_v57 }
  0xfd   :  { %v673_v2 = vpop.f32.mrb[4].mxu0  ;;  %v493_v4 = vadd.f32 %v700_v0, %v444_v62 }
  0xfe   :  { %v674_v3 = vpop.f32.mrb[5].mxu0 }
  0xff   :  { %v675_v5 = vadd.f32 %v674_v3, %v673_v2  ;;  %v676_v6 = vpop.f32.mrb[6].mxu0  ;;  %v701_v7 = vpop.f32.mrb[4].mxu1 }
 0x100   :  { %v677_v8 = vpop.f32.mrb[7].mxu0  ;;  %v702_v11 = vpop.f32.mrb[5].mxu1 }
 0x101   :  { %v449_v9 = vadd.f32 %v675_v5, %v581_v51  ;;  %v678_v10 = vadd.f32 %v677_v8, %v676_v6  ;;  %v703_v12 = vadd.f32 %v702_v11, %v701_v7  ;;  %v704_v13 = vpop.f32.mrb[6].mxu1 }
 0x102   :  { %v705_v15 = vpop.f32.mrb[7].mxu1 }
 0x103   :  { %v452_v14 = vadd.f32 %v678_v10, %v581_v51  ;;  %v706_v16 = vadd.f32 %v705_v15, %v704_v13  ;;  %v498_v17 = vadd.f32 %v703_v12, %v449_v9 }
 0x105   :  { %v501_v18 = vadd.f32 %v706_v16, %v452_v14 }
 0x115   :  { %v735_v19 = vpop.f32.mrb[8].mxu0 }
 0x116   :  { %v547_v20 = vadd.f32 %v735_v19, %v498_v17  ;;  %v538_v21 = vpop.f32.mrb[9].mxu0 }
 0x117   :  { %v539_v22 = vadd.f32 %v538_v21, %v490_v1  ;;  %v736_v23 = vpop.f32.mrb[10].mxu0 }
 0x118   :  { %v550_v24 = vadd.f32 %v736_v23, %v501_v18  ;;  %v541_v25 = vpop.f32.mrb[11].mxu0  ;;  %v555_v27 = vmax.f32 %v547_v20, 0.0 }
 0x119   :  { %v542_v26 = vadd.f32 %v541_v25, %v493_v4  ;;  %v553_v29 = vmax.f32 %v539_v22, 0.0 }
 0x11a   :  { %v556_v28 = vmax.f32 %v550_v24, 0.0 }
 0x11b   :  { %v554_v30 = vmax.f32 %v542_v26, 0.0 }
 0x11c   :  { %v648_v31 = vpack.c.bf16 %v556_v28, %v555_v27 }
 0x11d   :  { %v643_v32 = vpack.c.bf16 %v554_v30, %v553_v29 }
 0x11e   :  { %650 = vst [vmem:[%s973_s3 + $0x8] sm:$0xff] %v648_v31  }
 0x11f   :  { %644 = vst [vmem:[%s973_s3] sm:$0xff] %v643_v32  }

// kernel: qnetwork_forward.7
= control target key start
LH: loop header
LB: loop body
LE: loop exit
PB: predicated region body
PF: predicated region fallthrough
CT: control target
= control target key end

     0   :  { %s4124_s1 = inlined_call_operand.vmem [shape: bf16[1024,512], index: 1, kind: input, shape index: {}]   ;;  %s4125_s0 = inlined_call_operand.vmem [shape: bf16[16,1024], index: 0, kind: input, shape index: {}]   ;;  %s4126_s3 = inlined_call_operand.vmem [shape: bf16[512,128], index: 3, kind: input, shape index: {}]   ;;  %s4127_s2 = inlined_call_operand.vmem [shape: f32[1,512], index: 2, kind: input, shape index: {}]   ;;  %s4128_s4 = inlined_call_operand.vmem [shape: f32[1,128], index: 4, kind: input, shape index: {}]   ;;  %s4129_s5 = inlined_call_operand.vmem [shape: f32[16,128], index: 5, kind: output, shape index: {}]  }
   0x1   :  { %v2754_v0 = vld [vmem:[%s4124_s1 + $0x4] ss:$16 sps:$4 sm:$0xff]   ;;  %v2756_v1 = vld [vmem:[%s4124_s1 + $0xc] ss:$16 sps:$4 sm:$0xff]   ;;  %v2758_v2 = vld [vmem:[%s4124_s1] ss:$16 sps:$4 sm:$0xff]  }
   0x2   :  { %1625 = vmatprep.subr.bf16.mxu0 %v2754_v0  ;;  %v2759_v3 = vld [vmem:[%s4124_s1 + $0x8] ss:$16 sps:$4 sm:$0xff]   ;;  %1797 = vmatprep.subr.bf16.mxu1 %v2756_v1  ;;  %v2760_v4 = vld [vmem:[%s4124_s1 + $0x24] ss:$16 sps:$4 sm:$0xff]   ;;  %v2762_v5 = vld [vmem:[%s4124_s1 + $0x2c] ss:$16 sps:$4 sm:$0xff]  }
   0x3   :  { %1626 = vmatpush1.bf16.msra.mxu0 %v2758_v2  ;;  %1798 = vmatpush1.bf16.msra.mxu1 %v2759_v3  ;;  %v2764_v6 = vld [vmem:[%s4124_s1 + $0x20] ss:$16 sps:$4 sm:$0xff]   ;;  %v2765_v7 = vld [vmem:[%s4124_s1 + $0x28] ss:$16 sps:$4 sm:$0xff]   ;;  %v2766_v8 = vld [vmem:[%s4124_s1 + $0x44] ss:$16 sps:$4 sm:$0xff]  }
   0x4   :  { %1627 = vmatprep.subr.bf16.mxu0 %v2760_v4  ;;  %1799 = vmatprep.subr.bf16.mxu1 %v2762_v5  ;;  %v2768_v9 = vld [vmem:[%s4124_s1 + $0x4c] ss:$16 sps:$4 sm:$0xff]   ;;  %v2770_v10 = vld [vmem:[%s4124_s1 + $0x40] ss:$16 sps:$4 sm:$0xff]   ;;  %v2771_v11 = vld [vmem:[%s4124_s1 + $0x48] ss:$16 sps:$4 sm:$0xff]  }
   0x5   :  { %v2772_v12 = vld [vmem:[%s4124_s1 + $0x64] ss:$16 sps:$4 sm:$0xff]   ;;  %v2774_v13 = vld [vmem:[%s4124_s1 + $0x6c] ss:$16 sps:$4 sm:$0xff]   ;;  %v2776_v14 = vld [vmem:[%s4124_s1 + $0x60] ss:$16 sps:$4 sm:$0xff]  }
   0x6   :  { %v2777_v15 = vld [vmem:[%s4124_s1 + $0x68] ss:$16 sps:$4 sm:$0xff]   ;;  %v2778_v16 = vld [vmem:[%s4124_s1 + $0x84] ss:$16 sps:$4 sm:$0xff]   ;;  %v2780_v17 = vld [vmem:[%s4124_s1 + $0x8c] ss:$16 sps:$4 sm:$0xff]  }
   0x7   :  { %1628 = vmatpush1.bf16.msra.mxu0 %v2764_v6  ;;  %1800 = vmatpush1.bf16.msra.mxu1 %v2765_v7  ;;  %v2782_v18 = vld [vmem:[%s4124_s1 + $0x80] ss:$16 sps:$4 sm:$0xff]   ;;  %v2783_v19 = vld [vmem:[%s4124_s1 + $0x88] ss:$16 sps:$4 sm:$0xff]   ;;  %v2784_v20 = vld [vmem:[%s4124_s1 + $0xa4] ss:$16 sps:$4 sm:$0xff]  }
   0x8   :  { %1629 = vmatprep.subr.bf16.mxu0 %v2766_v8  ;;  %1801 = vmatprep.subr.bf16.mxu1 %v2768_v9  ;;  %v2786_v21 = vld [vmem:[%s4124_s1 + $0xac] ss:$16 sps:$4 sm:$0xff]   ;;  %v2788_v22 = vld [vmem:[%s4124_s1 + $0xa0] ss:$16 sps:$4 sm:$0xff]   ;;  %v2789_v23 = vld [vmem:[%s4124_s1 + $0xa8] ss:$16 sps:$4 sm:$0xff]  }
   0x9   :  { %v2790_v24 = vld [vmem:[%s4124_s1 + $0xc4] ss:$16 sps:$4 sm:$0xff]   ;;  %v2792_v25 = vld [vmem:[%s4124_s1 + $0xcc] ss:$16 sps:$4 sm:$0xff]   ;;  %v2794_v26 = vld [vmem:[%s4124_s1 + $0xc0] ss:$16 sps:$4 sm:$0xff]  }
   0xa   :  { %v2795_v27 = vld [vmem:[%s4124_s1 + $0xc8] ss:$16 sps:$4 sm:$0xff]   ;;  %v2796_v28 = vld [vmem:[%s4124_s1 + $0xe4] ss:$16 sps:$4 sm:$0xff]   ;;  %v2798_v29 = vld [vmem:[%s4124_s1 + $0xec] ss:$16 sps:$4 sm:$0xff]  }
   0xb   :  { %1630 = vmatpush1.bf16.msra.mxu0 %v2770_v10  ;;  %1802 = vmatpush1.bf16.msra.mxu1 %v2771_v11  ;;  %v2800_v30 = vld [vmem:[%s4124_s1 + $0xe0] ss:$16 sps:$4 sm:$0xff]   ;;  %v2801_v31 = vld [vmem:[%s4124_s1 + $0xe8] ss:$16 sps:$4 sm:$0xff]   ;;  %v2802_v32 = vld [vmem:[%s4124_s1 + $0x104] ss:$16 sps:$4 sm:$0xff]  }
   0xc   :  { %1631 = vmatprep.subr.bf16.mxu0 %v2772_v12  ;;  %1803 = vmatprep.subr.bf16.mxu1 %v2774_v13  ;;  %v2804_v33 = vld [vmem:[%s4124_s1 + $0x10c] ss:$16 sps:$4 sm:$0xff]   ;;  %v2806_v34 = vld [vmem:[%s4124_s1 + $0x100] ss:$16 sps:$4 sm:$0xff]   ;;  %v2807_v35 = vld [vmem:[%s4124_s1 + $0x108] ss:$16 sps:$4 sm:$0xff]  }
   0xd   :  { %v2808_v36 = vld [vmem:[%s4124_s1 + $0x124] ss:$16 sps:$4 sm:$0xff]   ;;  %v2810_v37 = vld [vmem:[%s4124_s1 + $0x12c] ss:$16 sps:$4 sm:$0xff]   ;;  %v2812_v38 = vld [vmem:[%s4124_s1 + $0x120] ss:$16 sps:$4 sm:$0xff]  }
   0xe   :  { %v2813_v39 = vld [vmem:[%s4124_s1 + $0x128] ss:$16 sps:$4 sm:$0xff]   ;;  %v2814_v40 = vld [vmem:[%s4124_s1 + $0x144] ss:$16 sps:$4 sm:$0xff]   ;;  %v2816_v41 = vld [vmem:[%s4124_s1 + $0x14c] ss:$16 sps:$4 sm:$0xff]  }
   0xf   :  { %1632 = vmatpush1.bf16.msra.mxu0 %v2776_v14  ;;  %1804 = vmatpush1.bf16.msra.mxu1 %v2777_v15  ;;  %v2818_v42 = vld [vmem:[%s4124_s1 + $0x140] ss:$16 sps:$4 sm:$0xff]   ;;  %v2819_v43 = vld [vmem:[%s4124_s1 + $0x148] ss:$16 sps:$4 sm:$0xff]   ;;  %v2820_v44 = vld [vmem:[%s4124_s1 + $0x164] ss:$16 sps:$4 sm:$0xff]  }
  0x10   :  { %1633 = vmatprep.subr.bf16.mxu0 %v2778_v16  ;;  %1805 = vmatprep.subr.bf16.mxu1 %v2780_v17  ;;  %v2822_v45 = vld [vmem:[%s4124_s1 + $0x16c] ss:$16 sps:$4 sm:$0xff]   ;;  %v41_v46 = vld [vmem:[%s4125_s0] sm:$0xff]  ;;  %v2825_v49 = vld [vmem:[%s4124_s1 + $0x168] ss:$16 sps:$4 sm:$0xff]  }
  0x11   :  { %v45_v47 = vld [vmem:[%s4125_s0 + $0x20] sm:$0xff]  ;;  %v2828_v52 = vld [vmem:[%s4124_s1 + $0x18c] ss:$16 sps:$4 sm:$0xff]   ;;  %v2831_v54 = vld [vmem:[%s4124_s1 + $0x188] ss:$16 sps:$4 sm:$0xff]  }
  0x12   :  { %v2824_v48 = vld [vmem:[%s4124_s1 + $0x160] ss:$16 sps:$4 sm:$0xff]   ;;  %v2390_v50 = vcombine.high %v41_v46, %v45_v47  ;;  %v2826_v51 = vld [vmem:[%s4124_s1 + $0x184] ss:$16 sps:$4 sm:$0xff]   ;;  %v2834_v56 = vld [vmem:[%s4124_s1 + $0x1ac] ss:$16 sps:$4 sm:$0xff]   ;;  %v2389_v5 = vcombine.low %v41_v46, %v45_v47 }
  0x13   :  { %1634 = vmatpush1.bf16.msra.mxu0 %v2782_v18  ;;  %1806 = vmatpush1.bf16.msra.mxu1 %v2783_v19  ;;  %v2830_v53 = vld [vmem:[%s4124_s1 + $0x180] ss:$16 sps:$4 sm:$0xff]   ;;  %v2832_v55 = vld [vmem:[%s4124_s1 + $0x1a4] ss:$16 sps:$4 sm:$0xff]   ;;  %v2837_v58 = vld [vmem:[%s4124_s1 + $0x1a8] ss:$16 sps:$4 sm:$0xff]  }
  0x14   :  { %1635 = vmatprep.subr.bf16.mxu0 %v2784_v20  ;;  %1807 = vmatprep.subr.bf16.mxu1 %v2786_v21  ;;  %v2836_v57 = vld [vmem:[%s4124_s1 + $0x1a0] ss:$16 sps:$4 sm:$0xff]   ;;  %v2838_v59 = vld [vmem:[%s4124_s1 + $0x1c4] ss:$16 sps:$4 sm:$0xff]   ;;  %v2840_v60 = vld [vmem:[%s4124_s1 + $0x1cc] ss:$16 sps:$4 sm:$0xff]  }
  0x15   :  { %1657 = vmatprep.mubr.bf16.mxu0 %v2390_v50  ;;  %1829 = vmatprep.mubr.bf16.mxu1 %v2390_v50  ;;  %v2842_v61 = vld [vmem:[%s4124_s1 + $0x1c0] ss:$16 sps:$4 sm:$0xff]   ;;  %v2843_v62 = vld [vmem:[%s4124_s1 + $0x1c8] ss:$16 sps:$4 sm:$0xff]   ;;  %v2844_v63 = vld [vmem:[%s4124_s1 + $0x1e4] ss:$16 sps:$4 sm:$0xff]  }
  0x16   :  { %v2846_v0 = vld [vmem:[%s4124_s1 + $0x1ec] ss:$16 sps:$4 sm:$0xff]   ;;  %v2848_v1 = vld [vmem:[%s4124_s1 + $0x1e0] ss:$16 sps:$4 sm:$0xff]   ;;  %v2849_v2 = vld [vmem:[%s4124_s1 + $0x1e8] ss:$16 sps:$4 sm:$0xff]  }
  0x17   :  { %1636 = vmatpush1.bf16.msra.mxu0 %v2788_v22  ;;  %1808 = vmatpush1.bf16.msra.mxu1 %v2789_v23  ;;  %v2852_v3 = vld [vmem:[%s4124_s1 + $0x204] ss:$16 sps:$4 sm:$0xff]   ;;  %v2855_v4 = vld [vmem:[%s4124_s1 + $0x20c] ss:$16 sps:$4 sm:$0xff]   ;;  %v2850_v6 = vld [vmem:[%s4124_s1 + $0x200] ss:$16 sps:$4 sm:$0xff]  }
  0x18   :  { %1637 = vmatprep.subr.bf16.mxu0 %v2790_v24  ;;  %1809 = vmatprep.subr.bf16.mxu1 %v2792_v25  ;;  %v2853_v7 = vld [vmem:[%s4124_s1 + $0x208] ss:$16 sps:$4 sm:$0xff]   ;;  %v2858_v8 = vld [vmem:[%s4124_s1 + $0x224] ss:$16 sps:$4 sm:$0xff]   ;;  %v2861_v9 = vld [vmem:[%s4124_s1 + $0x22c] ss:$16 sps:$4 sm:$0xff]  }
  0x19   :  { %v2856_v10 = vld [vmem:[%s4124_s1 + $0x220] ss:$16 sps:$4 sm:$0xff]   ;;  %v2859_v11 = vld [vmem:[%s4124_s1 + $0x228] ss:$16 sps:$4 sm:$0xff]   ;;  %v2864_v12 = vld [vmem:[%s4124_s1 + $0x244] ss:$16 sps:$4 sm:$0xff]  }
  0x1a   :  { %v2867_v13 = vld [vmem:[%s4124_s1 + $0x24c] ss:$16 sps:$4 sm:$0xff]   ;;  %v2862_v14 = vld [vmem:[%s4124_s1 + $0x240] ss:$16 sps:$4 sm:$0xff]   ;;  %v2865_v15 = vld [vmem:[%s4124_s1 + $0x248] ss:$16 sps:$4 sm:$0xff]  }
  0x1b   :  { %1638 = vmatpush1.bf16.msra.mxu0 %v2794_v26  ;;  %1810 = vmatpush1.bf16.msra.mxu1 %v2795_v27  ;;  %v2870_v16 = vld [vmem:[%s4124_s1 + $0x264] ss:$16 sps:$4 sm:$0xff]   ;;  %v2873_v17 = vld [vmem:[%s4124_s1 + $0x26c] ss:$16 sps:$4 sm:$0xff]   ;;  %v2868_v18 = vld [vmem:[%s4124_s1 + $0x260] ss:$16 sps:$4 sm:$0xff]  }
  0x1c   :  { %1639 = vmatprep.subr.bf16.mxu0 %v2796_v28  ;;  %1811 = vmatprep.subr.bf16.mxu1 %v2798_v29  ;;  %v2871_v19 = vld [vmem:[%s4124_s1 + $0x268] ss:$16 sps:$4 sm:$0xff]   ;;  %v2876_v20 = vld [vmem:[%s4124_s1 + $0x284] ss:$16 sps:$4 sm:$0xff]   ;;  %v2879_v21 = vld [vmem:[%s4124_s1 + $0x28c] ss:$16 sps:$4 sm:$0xff]  }
  0x1d   :  { %v2874_v22 = vld [vmem:[%s4124_s1 + $0x280] ss:$16 sps:$4 sm:$0xff]   ;;  %v2877_v23 = vld [vmem:[%s4124_s1 + $0x288] ss:$16 sps:$4 sm:$0xff]   ;;  %v2882_v24 = vld [vmem:[%s4124_s1 + $0x2a4] ss:$16 sps:$4 sm:$0xff]  }
  0x1e   :  { %v2885_v25 = vld [vmem:[%s4124_s1 + $0x2ac] ss:$16 sps:$4 sm:$0xff]   ;;  %v2880_v26 = vld [vmem:[%s4124_s1 + $0x2a0] ss:$16 sps:$4 sm:$0xff]   ;;  %v2883_v27 = vld [vmem:[%s4124_s1 + $0x2a8] ss:$16 sps:$4 sm:$0xff]  }
  0x1f   :  { %1640 = vmatpush1.bf16.msra.mxu0 %v2800_v30  ;;  %1812 = vmatpush1.bf16.msra.mxu1 %v2801_v31  ;;  %v2888_v28 = vld [vmem:[%s4124_s1 + $0x2c4] ss:$16 sps:$4 sm:$0xff]   ;;  %v2891_v29 = vld [vmem:[%s4124_s1 + $0x2cc] ss:$16 sps:$4 sm:$0xff]   ;;  %v2907_v46 = vld [vmem:[%s4124_s1 + $0x328] ss:$16 sps:$4 sm:$0xff]  }
  0x20   :  { %1641 = vmatprep.subr.bf16.mxu0 %v2802_v32  ;;  %1813 = vmatprep.subr.bf16.mxu1 %v2804_v33  ;;  %v3479_v30 = vld [vmem:[%s4125_s0 + $0x8] sm:$0xff]  ;;  %v2886_v32 = vld [vmem:[%s4124_s1 + $0x2c0] ss:$16 sps:$4 sm:$0xff]   ;;  %v2912_v47 = vld [vmem:[%s4124_s1 + $0x344] ss:$16 sps:$4 sm:$0xff]  }
  0x21   :  { %v3484_v31 = vld [vmem:[%s4125_s0 + $0x28] sm:$0xff] }
  0x22   :  { %v2889_v33 = vld [vmem:[%s4124_s1 + $0x2c8] ss:$16 sps:$4 sm:$0xff]  }
  0x23   :  { %1642 = vmatpush1.bf16.msra.mxu0 %v2806_v34  ;;  %1814 = vmatpush1.bf16.msra.mxu1 %v2807_v35  ;;  %v2392_v34 = vcombine.high %v3479_v30, %v3484_v31  ;;  %v2894_v35 = vld [vmem:[%s4124_s1 + $0x2e4] ss:$16 sps:$4 sm:$0xff]   ;;  %v2913_v50 = vld [vmem:[%s4124_s1 + $0x348] ss:$16 sps:$4 sm:$0xff]  }
  0x24   :  { %1643 = vmatprep.subr.bf16.mxu0 %v2808_v36  ;;  %1815 = vmatprep.subr.bf16.mxu1 %v2810_v37  ;;  %v2897_v36 = vld [vmem:[%s4124_s1 + $0x2ec] ss:$16 sps:$4 sm:$0xff]   ;;  %v2892_v37 = vld [vmem:[%s4124_s1 + $0x2e0] ss:$16 sps:$4 sm:$0xff]  }
  0x27   :  { %1644 = vmatpush1.bf16.msra.mxu0 %v2812_v38  ;;  %1816 = vmatpush1.bf16.msra.mxu1 %v2813_v39  ;;  %v2895_v38 = vld [vmem:[%s4124_s1 + $0x2e8] ss:$16 sps:$4 sm:$0xff]   ;;  %v2900_v39 = vld [vmem:[%s4124_s1 + $0x304] ss:$16 sps:$4 sm:$0xff]  }
  0x28   :  { %1645 = vmatprep.subr.bf16.mxu0 %v2814_v40  ;;  %1817 = vmatprep.subr.bf16.mxu1 %v2816_v41  ;;  %v2903_v40 = vld [vmem:[%s4124_s1 + $0x30c] ss:$16 sps:$4 sm:$0xff]   ;;  %v2898_v41 = vld [vmem:[%s4124_s1 + $0x300] ss:$16 sps:$4 sm:$0xff]  }
  0x2b   :  { %1646 = vmatpush1.bf16.msra.mxu0 %v2818_v42  ;;  %1818 = vmatpush1.bf16.msra.mxu1 %v2819_v43  ;;  %v2901_v42 = vld [vmem:[%s4124_s1 + $0x308] ss:$16 sps:$4 sm:$0xff]   ;;  %v2906_v43 = vld [vmem:[%s4124_s1 + $0x324] ss:$16 sps:$4 sm:$0xff]  }
  0x2c   :  { %1647 = vmatprep.subr.bf16.mxu0 %v2820_v44  ;;  %1819 = vmatprep.subr.bf16.mxu1 %v2822_v45  ;;  %v2909_v44 = vld [vmem:[%s4124_s1 + $0x32c] ss:$16 sps:$4 sm:$0xff]   ;;  %v2904_v45 = vld [vmem:[%s4124_s1 + $0x320] ss:$16 sps:$4 sm:$0xff]  }
  0x2f   :  { %1648 = vmatpush1.bf16.msra.mxu0 %v2824_v48  ;;  %1820 = vmatpush1.bf16.msra.mxu1 %v2825_v49  ;;  %v2915_v48 = vld [vmem:[%s4124_s1 + $0x34c] ss:$16 sps:$4 sm:$0xff]   ;;  %v2910_v49 = vld [vmem:[%s4124_s1 + $0x340] ss:$16 sps:$4 sm:$0xff]  }
  0x30   :  { %1649 = vmatprep.subr.bf16.mxu0 %v2826_v51  ;;  %1821 = vmatprep.subr.bf16.mxu1 %v2828_v52  ;;  %v2918_v51 = vld [vmem:[%s4124_s1 + $0x364] ss:$16 sps:$4 sm:$0xff]   ;;  %v2921_v52 = vld [vmem:[%s4124_s1 + $0x36c] ss:$16 sps:$4 sm:$0xff]  }
  0x33   :  { %1650 = vmatpush1.bf16.msra.mxu0 %v2830_v53  ;;  %1822 = vmatpush1.bf16.msra.mxu1 %v2831_v54  ;;  %v2916_v53 = vld [vmem:[%s4124_s1 + $0x360] ss:$16 sps:$4 sm:$0xff]   ;;  %v2919_v54 = vld [vmem:[%s4124_s1 + $0x368] ss:$16 sps:$4 sm:$0xff]  }
  0x34   :  { %1651 = vmatprep.subr.bf16.mxu0 %v2832_v55  ;;  %1823 = vmatprep.subr.bf16.mxu1 %v2834_v56  ;;  %v2924_v55 = vld [vmem:[%s4124_s1 + $0x384] ss:$16 sps:$4 sm:$0xff]   ;;  %v2927_v56 = vld [vmem:[%s4124_s1 + $0x38c] ss:$16 sps:$4 sm:$0xff]  }
  0x37   :  { %1652 = vmatpush1.bf16.msra.mxu0 %v2836_v57  ;;  %1824 = vmatpush1.bf16.msra.mxu1 %v2837_v58  ;;  %v2922_v57 = vld [vmem:[%s4124_s1 + $0x380] ss:$16 sps:$4 sm:$0xff]   ;;  %v2925_v58 = vld [vmem:[%s4124_s1 + $0x388] ss:$16 sps:$4 sm:$0xff]  }
  0x38   :  { %1653 = vmatprep.subr.bf16.mxu0 %v2838_v59  ;;  %1825 = vmatprep.subr.bf16.mxu1 %v2840_v60  ;;  %v2930_v59 = vld [vmem:[%s4124_s1 + $0x3a4] ss:$16 sps:$4 sm:$0xff]   ;;  %v2933_v60 = vld [vmem:[%s4124_s1 + $0x3ac] ss:$16 sps:$4 sm:$0xff]  }
  0x3b   :  { %1654 = vmatpush1.bf16.msra.mxu0 %v2842_v61  ;;  %1826 = vmatpush1.bf16.msra.mxu1 %v2843_v62  ;;  %v2928_v61 = vld [vmem:[%s4124_s1 + $0x3a0] ss:$16 sps:$4 sm:$0xff]   ;;  %v2931_v62 = vld [vmem:[%s4124_s1 + $0x3a8] ss:$16 sps:$4 sm:$0xff]  }
  0x3c   :  { %1655 = vmatprep.subr.bf16.mxu0 %v2844_v63  ;;  %1827 = vmatprep.subr.bf16.mxu1 %v2846_v0  ;;  %v2936_v63 = vld [vmem:[%s4124_s1 + $0x3c4] ss:$16 sps:$4 sm:$0xff]   ;;  %v2939_v0 = vld [vmem:[%s4124_s1 + $0x3cc] ss:$16 sps:$4 sm:$0xff]  }
  0x3f   :  { %1656 = vmatpush1.bf16.msra.mxu0 %v2848_v1  ;;  %1828 = vmatpush1.bf16.msra.mxu1 %v2849_v2  ;;  %v2934_v1 = vld [vmem:[%s4124_s1 + $0x3c0] ss:$16 sps:$4 sm:$0xff]   ;;  %v2937_v2 = vld [vmem:[%s4124_s1 + $0x3c8] ss:$16 sps:$4 sm:$0xff]  }
  0x40   :  { %1668 = vmatprep.subr.bf16.mxu0 %v2852_v3  ;;  %1840 = vmatprep.subr.bf16.mxu1 %v2855_v4  ;;  %v2942_v3 = vld [vmem:[%s4124_s1 + $0x3e4] ss:$16 sps:$4 sm:$0xff]   ;;  %v2945_v4 = vld [vmem:[%s4124_s1 + $0x3ec] ss:$16 sps:$4 sm:$0xff]  }
  0x42   :  { %1658 = vmatmul.mubr.bf16.vlgmr.msra.gmra.mrb[0].mxu0 %v2389_v5  ;;  %1830 = vmatmul.mubr.bf16.vlgmr.msra.gmra.mrb[0].mxu1 %v2389_v5  ;;  %v2940_v5 = vld [vmem:[%s4124_s1 + $0x3e0] ss:$16 sps:$4 sm:$0xff]  }
  0x43   :  { %1669 = vmatpush1.bf16.msra.mxu0 %v2850_v6  ;;  %1841 = vmatpush1.bf16.msra.mxu1 %v2853_v7  ;;  %v2943_v6 = vld [vmem:[%s4124_s1 + $0x3e8] ss:$16 sps:$4 sm:$0xff]   ;;  %v2948_v7 = vld [vmem:[%s4124_s1 + $0x404] ss:$16 sps:$4 sm:$0xff]  }
  0x44   :  { %1670 = vmatprep.subr.bf16.mxu0 %v2858_v8  ;;  %1842 = vmatprep.subr.bf16.mxu1 %v2861_v9  ;;  %v2951_v8 = vld [vmem:[%s4124_s1 + $0x40c] ss:$16 sps:$4 sm:$0xff]   ;;  %v2391_v9 = vcombine.low %v3479_v30, %v3484_v31  ;;  %v2973_v30 = vld [vmem:[%s4124_s1 + $0x488] ss:$16 sps:$4 sm:$0xff]   ;;  %v2978_v31 = vld [vmem:[%s4124_s1 + $0x4a4] ss:$16 sps:$4 sm:$0xff]  }
  0x45   :  { %1700 = vmatprep.mubr.bf16.mxu0 %v2392_v34  ;;  %1872 = vmatprep.mubr.bf16.mxu1 %v2392_v34  ;;  %v2979_v34 = vld [vmem:[%s4124_s1 + $0x4a8] ss:$16 sps:$4 sm:$0xff]  }
  0x47   :  { %1671 = vmatpush1.bf16.msra.mxu0 %v2856_v10  ;;  %1843 = vmatpush1.bf16.msra.mxu1 %v2859_v11  ;;  %v2946_v10 = vld [vmem:[%s4124_s1 + $0x400] ss:$16 sps:$4 sm:$0xff]   ;;  %v2949_v11 = vld [vmem:[%s4124_s1 + $0x408] ss:$16 sps:$4 sm:$0xff]  }
  0x48   :  { %1672 = vmatprep.subr.bf16.mxu0 %v2864_v12  ;;  %1844 = vmatprep.subr.bf16.mxu1 %v2867_v13  ;;  %v2954_v12 = vld [vmem:[%s4124_s1 + $0x424] ss:$16 sps:$4 sm:$0xff]   ;;  %v2957_v13 = vld [vmem:[%s4124_s1 + $0x42c] ss:$16 sps:$4 sm:$0xff]  }
  0x4b   :  { %1673 = vmatpush1.bf16.msra.mxu0 %v2862_v14  ;;  %1845 = vmatpush1.bf16.msra.mxu1 %v2865_v15  ;;  %v3625_v14 = vld [vmem:[%s4125_s0 + $0x10] sm:$0xff] }
  0x4c   :  { %1674 = vmatprep.subr.bf16.mxu0 %v2870_v16  ;;  %1846 = vmatprep.subr.bf16.mxu1 %v2873_v17  ;;  %v3630_v15 = vld [vmem:[%s4125_s0 + $0x30] sm:$0xff] }
  0x4d   :  { %v2394_v16 = vcombine.high %v3625_v14, %v3630_v15  ;;  %v2952_v17 = vld [vmem:[%s4124_s1 + $0x420] ss:$16 sps:$4 sm:$0xff]  }
  0x4f   :  { %1675 = vmatpush1.bf16.msra.mxu0 %v2868_v18  ;;  %1847 = vmatpush1.bf16.msra.mxu1 %v2871_v19  ;;  %v2955_v18 = vld [vmem:[%s4124_s1 + $0x428] ss:$16 sps:$4 sm:$0xff]   ;;  %v2960_v19 = vld [vmem:[%s4124_s1 + $0x444] ss:$16 sps:$4 sm:$0xff]  }
  0x50   :  { %1676 = vmatprep.subr.bf16.mxu0 %v2876_v20  ;;  %1848 = vmatprep.subr.bf16.mxu1 %v2879_v21  ;;  %v2963_v20 = vld [vmem:[%s4124_s1 + $0x44c] ss:$16 sps:$4 sm:$0xff]   ;;  %v2958_v21 = vld [vmem:[%s4124_s1 + $0x440] ss:$16 sps:$4 sm:$0xff]  }
  0x53   :  { %1677 = vmatpush1.bf16.msra.mxu0 %v2874_v22  ;;  %1849 = vmatpush1.bf16.msra.mxu1 %v2877_v23  ;;  %v2961_v22 = vld [vmem:[%s4124_s1 + $0x448] ss:$16 sps:$4 sm:$0xff]   ;;  %v2966_v23 = vld [vmem:[%s4124_s1 + $0x464] ss:$16 sps:$4 sm:$0xff]  }
  0x54   :  { %1678 = vmatprep.subr.bf16.mxu0 %v2882_v24  ;;  %1850 = vmatprep.subr.bf16.mxu1 %v2885_v25  ;;  %v2969_v24 = vld [vmem:[%s4124_s1 + $0x46c] ss:$16 sps:$4 sm:$0xff]   ;;  %v2964_v25 = vld [vmem:[%s4124_s1 + $0x460] ss:$16 sps:$4 sm:$0xff]  }
  0x57   :  { %1679 = vmatpush1.bf16.msra.mxu0 %v2880_v26  ;;  %1851 = vmatpush1.bf16.msra.mxu1 %v2883_v27  ;;  %v2967_v26 = vld [vmem:[%s4124_s1 + $0x468] ss:$16 sps:$4 sm:$0xff]   ;;  %v2972_v27 = vld [vmem:[%s4124_s1 + $0x484] ss:$16 sps:$4 sm:$0xff]  }
  0x58   :  { %1680 = vmatprep.subr.bf16.mxu0 %v2888_v28  ;;  %1852 = vmatprep.subr.bf16.mxu1 %v2891_v29  ;;  %v2975_v28 = vld [vmem:[%s4124_s1 + $0x48c] ss:$16 sps:$4 sm:$0xff]   ;;  %v2970_v29 = vld [vmem:[%s4124_s1 + $0x480] ss:$16 sps:$4 sm:$0xff]  }
  0x5b   :  { %1681 = vmatpush1.bf16.msra.mxu0 %v2886_v32  ;;  %1853 = vmatpush1.bf16.msra.mxu1 %v2889_v33  ;;  %v2981_v32 = vld [vmem:[%s4124_s1 + $0x4ac] ss:$16 sps:$4 sm:$0xff]   ;;  %v2976_v33 = vld [vmem:[%s4124_s1 + $0x4a0] ss:$16 sps:$4 sm:$0xff]  }
  0x5c   :  { %1682 = vmatprep.subr.bf16.mxu0 %v2894_v35  ;;  %1854 = vmatprep.subr.bf16.mxu1 %v2897_v36  ;;  %v2984_v35 = vld [vmem:[%s4124_s1 + $0x4c4] ss:$16 sps:$4 sm:$0xff]   ;;  %v2987_v36 = vld [vmem:[%s4124_s1 + $0x4cc] ss:$16 sps:$4 sm:$0xff]  }
  0x5f   :  { %1683 = vmatpush1.bf16.msra.mxu0 %v2892_v37  ;;  %1855 = vmatpush1.bf16.msra.mxu1 %v2895_v38  ;;  %v2982_v37 = vld [vmem:[%s4124_s1 + $0x4c0] ss:$16 sps:$4 sm:$0xff]   ;;  %v2985_v38 = vld [vmem:[%s4124_s1 + $0x4c8] ss:$16 sps:$4 sm:$0xff]  }
  0x60   :  { %1684 = vmatprep.subr.bf16.mxu0 %v2900_v39  ;;  %1856 = vmatprep.subr.bf16.mxu1 %v2903_v40  ;;  %v2990_v39 = vld [vmem:[%s4124_s1 + $0x4e4] ss:$16 sps:$4 sm:$0xff]   ;;  %v2993_v40 = vld [vmem:[%s4124_s1 + $0x4ec] ss:$16 sps:$4 sm:$0xff]  }
  0x63   :  { %1685 = vmatpush1.bf16.msra.mxu0 %v2898_v41  ;;  %1857 = vmatpush1.bf16.msra.mxu1 %v2901_v42  ;;  %v2988_v41 = vld [vmem:[%s4124_s1 + $0x4e0] ss:$16 sps:$4 sm:$0xff]   ;;  %v2991_v42 = vld [vmem:[%s4124_s1 + $0x4e8] ss:$16 sps:$4 sm:$0xff]  }
  0x64   :  { %1686 = vmatprep.subr.bf16.mxu0 %v2906_v43  ;;  %1858 = vmatprep.subr.bf16.mxu1 %v2909_v44  ;;  %v2996_v43 = vld [vmem:[%s4124_s1 + $0x504] ss:$16 sps:$4 sm:$0xff]   ;;  %v2999_v44 = vld [vmem:[%s4124_s1 + $0x50c] ss:$16 sps:$4 sm:$0xff]  }
  0x67   :  { %1687 = vmatpush1.bf16.msra.mxu0 %v2904_v45  ;;  %1859 = vmatpush1.bf16.msra.mxu1 %v2907_v46  ;;  %v2994_v45 = vld [vmem:[%s4124_s1 + $0x500] ss:$16 sps:$4 sm:$0xff]   ;;  %v2997_v46 = vld [vmem:[%s4124_s1 + $0x508] ss:$16 sps:$4 sm:$0xff]  }
  0x68   :  { %1688 = vmatprep.subr.bf16.mxu0 %v2912_v47  ;;  %1860 = vmatprep.subr.bf16.mxu1 %v2915_v48  ;;  %v3002_v47 = vld [vmem:[%s4124_s1 + $0x524] ss:$16 sps:$4 sm:$0xff]   ;;  %v3005_v48 = vld [vmem:[%s4124_s1 + $0x52c] ss:$16 sps:$4 sm:$0xff]  }
  0x6b   :  { %1689 = vmatpush1.bf16.msra.mxu0 %v2910_v49  ;;  %1861 = vmatpush1.bf16.msra.mxu1 %v2913_v50  ;;  %v3000_v49 = vld [vmem:[%s4124_s1 + $0x520] ss:$16 sps:$4 sm:$0xff]   ;;  %v3003_v50 = vld [vmem:[%s4124_s1 + $0x528] ss:$16 sps:$4 sm:$0xff]  }
  0x6c   :  { %1690 = vmatprep.subr.bf16.mxu0 %v2918_v51  ;;  %1862 = vmatprep.subr.bf16.mxu1 %v2921_v52  ;;  %v3008_v51 = vld [vmem:[%s4124_s1 + $0x544] ss:$16 sps:$4 sm:$0xff]   ;;  %v3011_v52 = vld [vmem:[%s4124_s1 + $0x54c] ss:$16 sps:$4 sm:$0xff]  }
  0x6f   :  { %1691 = vmatpush1.bf16.msra.mxu0 %v2916_v53  ;;  %1863 = vmatpush1.bf16.msra.mxu1 %v2919_v54  ;;  %v3006_v53 = vld [vmem:[%s4124_s1 + $0x540] ss:$16 sps:$4 sm:$0xff]   ;;  %v3009_v54 = vld [vmem:[%s4124_s1 + $0x548] ss:$16 sps:$4 sm:$0xff]  }
  0x70   :  { %1692 = vmatprep.subr.bf16.mxu0 %v2924_v55  ;;  %1864 = vmatprep.subr.bf16.mxu1 %v2927_v56  ;;  %v3014_v55 = vld [vmem:[%s4124_s1 + $0x564] ss:$16 sps:$4 sm:$0xff]   ;;  %v3017_v56 = vld [vmem:[%s4124_s1 + $0x56c] ss:$16 sps:$4 sm:$0xff]  }
  0x73   :  { %1693 = vmatpush1.bf16.msra.mxu0 %v2922_v57  ;;  %1865 = vmatpush1.bf16.msra.mxu1 %v2925_v58  ;;  %v3012_v57 = vld [vmem:[%s4124_s1 + $0x560] ss:$16 sps:$4 sm:$0xff]   ;;  %v3015_v58 = vld [vmem:[%s4124_s1 + $0x568] ss:$16 sps:$4 sm:$0xff]  }
  0x74   :  { %1694 = vmatprep.subr.bf16.mxu0 %v2930_v59  ;;  %1866 = vmatprep.subr.bf16.mxu1 %v2933_v60  ;;  %v3020_v59 = vld [vmem:[%s4124_s1 + $0x584] ss:$16 sps:$4 sm:$0xff]   ;;  %v3023_v60 = vld [vmem:[%s4124_s1 + $0x58c] ss:$16 sps:$4 sm:$0xff]  }
  0x77   :  { %1695 = vmatpush1.bf16.msra.mxu0 %v2928_v61  ;;  %1867 = vmatpush1.bf16.msra.mxu1 %v2931_v62  ;;  %v3018_v61 = vld [vmem:[%s4124_s1 + $0x580] ss:$16 sps:$4 sm:$0xff]   ;;  %v3021_v62 = vld [vmem:[%s4124_s1 + $0x588] ss:$16 sps:$4 sm:$0xff]  }
  0x78   :  { %1696 = vmatprep.subr.bf16.mxu0 %v2936_v63  ;;  %1868 = vmatprep.subr.bf16.mxu1 %v2939_v0  ;;  %v3026_v63 = vld [vmem:[%s4124_s1 + $0x5a4] ss:$16 sps:$4 sm:$0xff]   ;;  %v3029_v0 = vld [vmem:[%s4124_s1 + $0x5ac] ss:$16 sps:$4 sm:$0xff]  }
  0x7b   :  { %1697 = vmatpush1.bf16.msra.mxu0 %v2934_v1  ;;  %1869 = vmatpush1.bf16.msra.mxu1 %v2937_v2  ;;  %v3024_v1 = vld [vmem:[%s4124_s1 + $0x5a0] ss:$16 sps:$4 sm:$0xff]   ;;  %v3027_v2 = vld [vmem:[%s4124_s1 + $0x5a8] ss:$16 sps:$4 sm:$0xff]  }
  0x7c   :  { %1698 = vmatprep.subr.bf16.mxu0 %v2942_v3  ;;  %1870 = vmatprep.subr.bf16.mxu1 %v2945_v4  ;;  %v3032_v3 = vld [vmem:[%s4124_s1 + $0x5c4] ss:$16 sps:$4 sm:$0xff]   ;;  %v3035_v4 = vld [vmem:[%s4124_s1 + $0x5cc] ss:$16 sps:$4 sm:$0xff]  }
  0x7f   :  { %1699 = vmatpush1.bf16.msra.mxu0 %v2940_v5  ;;  %1871 = vmatpush1.bf16.msra.mxu1 %v2943_v6  ;;  %v3030_v5 = vld [vmem:[%s4124_s1 + $0x5c0] ss:$16 sps:$4 sm:$0xff]   ;;  %v3033_v6 = vld [vmem:[%s4124_s1 + $0x5c8] ss:$16 sps:$4 sm:$0xff]  }
  0x80   :  { %1711 = vmatprep.subr.bf16.mxu0 %v2948_v7  ;;  %1883 = vmatprep.subr.bf16.mxu1 %v2951_v8  ;;  %v3038_v7 = vld [vmem:[%s4124_s1 + $0x5e4] ss:$16 sps:$4 sm:$0xff]   ;;  %v3041_v8 = vld [vmem:[%s4124_s1 + $0x5ec] ss:$16 sps:$4 sm:$0xff]  }
  0x82   :  { %1701 = vmatmul.mubr.bf16.vlgmr.msra.gmra.mrb[0].mxu0 %v2391_v9  ;;  %1873 = vmatmul.mubr.bf16.vlgmr.msra.gmra.mrb[0].mxu1 %v2391_v9  ;;  %v3036_v9 = vld [vmem:[%s4124_s1 + $0x5e0] ss:$16 sps:$4 sm:$0xff]  }
  0x83   :  { %1712 = vmatpush1.bf16.msra.mxu0 %v2946_v10  ;;  %1884 = vmatpush1.bf16.msra.mxu1 %v2949_v11  ;;  %v3039_v10 = vld [vmem:[%s4124_s1 + $0x5e8] ss:$16 sps:$4 sm:$0xff]   ;;  %v3044_v11 = vld [vmem:[%s4124_s1 + $0x604] ss:$16 sps:$4 sm:$0xff]  }
  0x84   :  { %1713 = vmatprep.subr.bf16.mxu0 %v2954_v12  ;;  %1885 = vmatprep.subr.bf16.mxu1 %v2957_v13  ;;  %v3047_v12 = vld [vmem:[%s4124_s1 + $0x60c] ss:$16 sps:$4 sm:$0xff]   ;;  %v3042_v13 = vld [vmem:[%s4124_s1 + $0x600] ss:$16 sps:$4 sm:$0xff]  }
  0x85   :  { %1743 = vmatprep.mubr.bf16.mxu0 %v2394_v16  ;;  %1915 = vmatprep.mubr.bf16.mxu1 %v2394_v16  ;;  %v3045_v16 = vld [vmem:[%s4124_s1 + $0x608] ss:$16 sps:$4 sm:$0xff]  }
  0x87   :  { %1714 = vmatpush1.bf16.msra.mxu0 %v2952_v17  ;;  %1886 = vmatpush1.bf16.msra.mxu1 %v2955_v18  ;;  %v3823_v17 = vld [vmem:[%s4125_s0 + $0x18] sm:$0xff]  ;;  %v2393_v18 = vcombine.low %v3625_v14, %v3630_v15  ;;  %v3048_v14 = vld [vmem:[%s4124_s1 + $0x620] ss:$16 sps:$4 sm:$0xff]  }
  0x88   :  { %1715 = vmatprep.subr.bf16.mxu0 %v2960_v19  ;;  %1887 = vmatprep.subr.bf16.mxu1 %v2963_v20  ;;  %v3830_v19 = vld [vmem:[%s4125_s0 + $0x38] sm:$0xff]  ;;  %v3050_v20 = vld [vmem:[%s4124_s1 + $0x624] ss:$16 sps:$4 sm:$0xff]  }
  0x89   :  { %v3051_v15 = vld [vmem:[%s4124_s1 + $0x628] ss:$16 sps:$4 sm:$0xff]  }
  0x8b   :  { %1716 = vmatpush1.bf16.msra.mxu0 %v2958_v21  ;;  %1888 = vmatpush1.bf16.msra.mxu1 %v2961_v22  ;;  %v3053_v21 = vld [vmem:[%s4124_s1 + $0x62c] ss:$16 sps:$4 sm:$0xff]   ;;  %v2396_v22 = vcombine.high %v3823_v17, %v3830_v19 }
  0x8c   :  { %1717 = vmatprep.subr.bf16.mxu0 %v2966_v23  ;;  %1889 = vmatprep.subr.bf16.mxu1 %v2969_v24  ;;  %v3056_v23 = vld [vmem:[%s4124_s1 + $0x644] ss:$16 sps:$4 sm:$0xff]   ;;  %v3059_v24 = vld [vmem:[%s4124_s1 + $0x64c] ss:$16 sps:$4 sm:$0xff]  }
  0x8f   :  { %1718 = vmatpush1.bf16.msra.mxu0 %v2964_v25  ;;  %1890 = vmatpush1.bf16.msra.mxu1 %v2967_v26  ;;  %v3054_v25 = vld [vmem:[%s4124_s1 + $0x640] ss:$16 sps:$4 sm:$0xff]   ;;  %v3057_v26 = vld [vmem:[%s4124_s1 + $0x648] ss:$16 sps:$4 sm:$0xff]  }
  0x90   :  { %1719 = vmatprep.subr.bf16.mxu0 %v2972_v27  ;;  %1891 = vmatprep.subr.bf16.mxu1 %v2975_v28  ;;  %v3062_v27 = vld [vmem:[%s4124_s1 + $0x664] ss:$16 sps:$4 sm:$0xff]   ;;  %v3065_v28 = vld [vmem:[%s4124_s1 + $0x66c] ss:$16 sps:$4 sm:$0xff]  }
  0x93   :  { %1720 = vmatpush1.bf16.msra.mxu0 %v2970_v29  ;;  %1892 = vmatpush1.bf16.msra.mxu1 %v2973_v30  ;;  %v3060_v29 = vld [vmem:[%s4124_s1 + $0x660] ss:$16 sps:$4 sm:$0xff]   ;;  %v3063_v30 = vld [vmem:[%s4124_s1 + $0x668] ss:$16 sps:$4 sm:$0xff]  }
  0x94   :  { %1721 = vmatprep.subr.bf16.mxu0 %v2978_v31  ;;  %1893 = vmatprep.subr.bf16.mxu1 %v2981_v32  ;;  %v3068_v31 = vld [vmem:[%s4124_s1 + $0x684] ss:$16 sps:$4 sm:$0xff]   ;;  %v3071_v32 = vld [vmem:[%s4124_s1 + $0x68c] ss:$16 sps:$4 sm:$0xff]  }
  0x97   :  { %1722 = vmatpush1.bf16.msra.mxu0 %v2976_v33  ;;  %1894 = vmatpush1.bf16.msra.mxu1 %v2979_v34  ;;  %v3066_v33 = vld [vmem:[%s4124_s1 + $0x680] ss:$16 sps:$4 sm:$0xff]   ;;  %v3069_v34 = vld [vmem:[%s4124_s1 + $0x688] ss:$16 sps:$4 sm:$0xff]  }
  0x98   :  { %1723 = vmatprep.subr.bf16.mxu0 %v2984_v35  ;;  %1895 = vmatprep.subr.bf16.mxu1 %v2987_v36  ;;  %v3074_v35 = vld [vmem:[%s4124_s1 + $0x6a4] ss:$16 sps:$4 sm:$0xff]   ;;  %v3077_v36 = vld [vmem:[%s4124_s1 + $0x6ac] ss:$16 sps:$4 sm:$0xff]  }
  0x9b   :  { %1724 = vmatpush1.bf16.msra.mxu0 %v2982_v37  ;;  %1896 = vmatpush1.bf16.msra.mxu1 %v2985_v38  ;;  %v3072_v37 = vld [vmem:[%s4124_s1 + $0x6a0] ss:$16 sps:$4 sm:$0xff]   ;;  %v3075_v38 = vld [vmem:[%s4124_s1 + $0x6a8] ss:$16 sps:$4 sm:$0xff]  }
  0x9c   :  { %1725 = vmatprep.subr.bf16.mxu0 %v2990_v39  ;;  %1897 = vmatprep.subr.bf16.mxu1 %v2993_v40  ;;  %v3080_v39 = vld [vmem:[%s4124_s1 + $0x6c4] ss:$16 sps:$4 sm:$0xff]   ;;  %v3083_v40 = vld [vmem:[%s4124_s1 + $0x6cc] ss:$16 sps:$4 sm:$0xff]  }
  0x9f   :  { %1726 = vmatpush1.bf16.msra.mxu0 %v2988_v41  ;;  %1898 = vmatpush1.bf16.msra.mxu1 %v2991_v42  ;;  %v3078_v41 = vld [vmem:[%s4124_s1 + $0x6c0] ss:$16 sps:$4 sm:$0xff]   ;;  %v3081_v42 = vld [vmem:[%s4124_s1 + $0x6c8] ss:$16 sps:$4 sm:$0xff]  }
  0xa0   :  { %1727 = vmatprep.subr.bf16.mxu0 %v2996_v43  ;;  %1899 = vmatprep.subr.bf16.mxu1 %v2999_v44  ;;  %v3086_v43 = vld [vmem:[%s4124_s1 + $0x6e4] ss:$16 sps:$4 sm:$0xff]   ;;  %v3089_v44 = vld [vmem:[%s4124_s1 + $0x6ec] ss:$16 sps:$4 sm:$0xff]  }
  0xa3   :  { %1728 = vmatpush1.bf16.msra.mxu0 %v2994_v45  ;;  %1900 = vmatpush1.bf16.msra.mxu1 %v2997_v46  ;;  %v3084_v45 = vld [vmem:[%s4124_s1 + $0x6e0] ss:$16 sps:$4 sm:$0xff]   ;;  %v3087_v46 = vld [vmem:[%s4124_s1 + $0x6e8] ss:$16 sps:$4 sm:$0xff]  }
  0xa4   :  { %1729 = vmatprep.subr.bf16.mxu0 %v3002_v47  ;;  %1901 = vmatprep.subr.bf16.mxu1 %v3005_v48  ;;  %v3092_v47 = vld [vmem:[%s4124_s1 + $0x704] ss:$16 sps:$4 sm:$0xff]   ;;  %v3095_v48 = vld [vmem:[%s4124_s1 + $0x70c] ss:$16 sps:$4 sm:$0xff]  }
  0xa7   :  { %1730 = vmatpush1.bf16.msra.mxu0 %v3000_v49  ;;  %1902 = vmatpush1.bf16.msra.mxu1 %v3003_v50  ;;  %v3090_v49 = vld [vmem:[%s4124_s1 + $0x700] ss:$16 sps:$4 sm:$0xff]   ;;  %v3093_v50 = vld [vmem:[%s4124_s1 + $0x708] ss:$16 sps:$4 sm:$0xff]  }
  0xa8   :  { %1731 = vmatprep.subr.bf16.mxu0 %v3008_v51  ;;  %1903 = vmatprep.subr.bf16.mxu1 %v3011_v52  ;;  %v3098_v51 = vld [vmem:[%s4124_s1 + $0x724] ss:$16 sps:$4 sm:$0xff]   ;;  %v3101_v52 = vld [vmem:[%s4124_s1 + $0x72c] ss:$16 sps:$4 sm:$0xff]  }
  0xab   :  { %1732 = vmatpush1.bf16.msra.mxu0 %v3006_v53  ;;  %1904 = vmatpush1.bf16.msra.mxu1 %v3009_v54  ;;  %v3096_v53 = vld [vmem:[%s4124_s1 + $0x720] ss:$16 sps:$4 sm:$0xff]   ;;  %v3099_v54 = vld [vmem:[%s4124_s1 + $0x728] ss:$16 sps:$4 sm:$0xff]  }
  0xac   :  { %1733 = vmatprep.subr.bf16.mxu0 %v3014_v55  ;;  %1905 = vmatprep.subr.bf16.mxu1 %v3017_v56  ;;  %v3104_v55 = vld [vmem:[%s4124_s1 + $0x744] ss:$16 sps:$4 sm:$0xff]   ;;  %v3107_v56 = vld [vmem:[%s4124_s1 + $0x74c] ss:$16 sps:$4 sm:$0xff]  }
  0xaf   :  { %1734 = vmatpush1.bf16.msra.mxu0 %v3012_v57  ;;  %1906 = vmatpush1.bf16.msra.mxu1 %v3015_v58  ;;  %v3102_v57 = vld [vmem:[%s4124_s1 + $0x740] ss:$16 sps:$4 sm:$0xff]   ;;  %v3105_v58 = vld [vmem:[%s4124_s1 + $0x748] ss:$16 sps:$4 sm:$0xff]  }
  0xb0   :  { %1735 = vmatprep.subr.bf16.mxu0 %v3020_v59  ;;  %1907 = vmatprep.subr.bf16.mxu1 %v3023_v60  ;;  %v3110_v59 = vld [vmem:[%s4124_s1 + $0x764] ss:$16 sps:$4 sm:$0xff]   ;;  %v3113_v60 = vld [vmem:[%s4124_s1 + $0x76c] ss:$16 sps:$4 sm:$0xff]  }
  0xb3   :  { %1736 = vmatpush1.bf16.msra.mxu0 %v3018_v61  ;;  %1908 = vmatpush1.bf16.msra.mxu1 %v3021_v62  ;;  %v3108_v61 = vld [vmem:[%s4124_s1 + $0x760] ss:$16 sps:$4 sm:$0xff]   ;;  %v3111_v62 = vld [vmem:[%s4124_s1 + $0x768] ss:$16 sps:$4 sm:$0xff]  }
  0xb4   :  { %1737 = vmatprep.subr.bf16.mxu0 %v3026_v63  ;;  %1909 = vmatprep.subr.bf16.mxu1 %v3029_v0  ;;  %v3116_v63 = vld [vmem:[%s4124_s1 + $0x784] ss:$16 sps:$4 sm:$0xff]   ;;  %v3119_v0 = vld [vmem:[%s4124_s1 + $0x78c] ss:$16 sps:$4 sm:$0xff]  }
  0xb7   :  { %1738 = vmatpush1.bf16.msra.mxu0 %v3024_v1  ;;  %1910 = vmatpush1.bf16.msra.mxu1 %v3027_v2  ;;  %v3114_v1 = vld [vmem:[%s4124_s1 + $0x780] ss:$16 sps:$4 sm:$0xff]   ;;  %v3117_v2 = vld [vmem:[%s4124_s1 + $0x788] ss:$16 sps:$4 sm:$0xff]  }
  0xb8   :  { %1739 = vmatprep.subr.bf16.mxu0 %v3032_v3  ;;  %1911 = vmatprep.subr.bf16.mxu1 %v3035_v4  ;;  %v3122_v3 = vld [vmem:[%s4124_s1 + $0x7a4] ss:$16 sps:$4 sm:$0xff]   ;;  %v3125_v4 = vld [vmem:[%s4124_s1 + $0x7ac] ss:$16 sps:$4 sm:$0xff]  }
  0xbb   :  { %1740 = vmatpush1.bf16.msra.mxu0 %v3030_v5  ;;  %1912 = vmatpush1.bf16.msra.mxu1 %v3033_v6  ;;  %v3120_v5 = vld [vmem:[%s4124_s1 + $0x7a0] ss:$16 sps:$4 sm:$0xff]   ;;  %v3123_v6 = vld [vmem:[%s4124_s1 + $0x7a8] ss:$16 sps:$4 sm:$0xff]  }
  0xbc   :  { %1741 = vmatprep.subr.bf16.mxu0 %v3038_v7  ;;  %1913 = vmatprep.subr.bf16.mxu1 %v3041_v8  ;;  %v3128_v7 = vld [vmem:[%s4124_s1 + $0x7c4] ss:$16 sps:$4 sm:$0xff]   ;;  %v3131_v8 = vld [vmem:[%s4124_s1 + $0x7cc] ss:$16 sps:$4 sm:$0xff]  }
  0xbf   :  { %1742 = vmatpush1.bf16.msra.mxu0 %v3036_v9  ;;  %1914 = vmatpush1.bf16.msra.mxu1 %v3039_v10  ;;  %v3126_v9 = vld [vmem:[%s4124_s1 + $0x7c0] ss:$16 sps:$4 sm:$0xff]   ;;  %v3129_v10 = vld [vmem:[%s4124_s1 + $0x7c8] ss:$16 sps:$4 sm:$0xff]  }
  0xc0   :  { %1754 = vmatprep.subr.bf16.mxu0 %v3044_v11  ;;  %1926 = vmatprep.subr.bf16.mxu1 %v3047_v12  ;;  %v3134_v11 = vld [vmem:[%s4124_s1 + $0x7e4] ss:$16 sps:$4 sm:$0xff]   ;;  %v3137_v12 = vld [vmem:[%s4124_s1 + $0x7ec] ss:$16 sps:$4 sm:$0xff]  }
  0xc2   :  { %1744 = vmatmul.mubr.bf16.vlgmr.msra.gmra.mrb[0].mxu0 %v2393_v18  ;;  %1916 = vmatmul.mubr.bf16.vlgmr.msra.gmra.mrb[0].mxu1 %v2393_v18  ;;  %v3138_v18 = vld [vmem:[%s4126_s3 + $0x40] sm:$0xff]  }
  0xc3   :  { %1755 = vmatpush1.bf16.msra.mxu0 %v3042_v13  ;;  %1927 = vmatpush1.bf16.msra.mxu1 %v3045_v16  ;;  %v3132_v13 = vld [vmem:[%s4124_s1 + $0x7e0] ss:$16 sps:$4 sm:$0xff]   ;;  %v3135_v16 = vld [vmem:[%s4124_s1 + $0x7e8] ss:$16 sps:$4 sm:$0xff]  }
  0xc4   :  { %1756 = vmatprep.subr.bf16.mxu0 %v3050_v20  ;;  %1928 = vmatprep.subr.bf16.mxu1 %v3053_v21  ;;  %v3139_v20 = vld [vmem:[%s4126_s3 + $0xc0] sm:$0xff]   ;;  %v2395_v21 = vcombine.low %v3823_v17, %v3830_v19  ;;  %v3143_v17 = vld [vmem:[%s4126_s3 + $0xc8] sm:$0xff]  }
  0xc5   :  { %1786 = vmatprep.mubr.bf16.mxu0 %v2396_v22  ;;  %1958 = vmatprep.mubr.bf16.mxu1 %v2396_v22  ;;  %v3142_v22 = vld [vmem:[%s4126_s3 + $0x48] sm:$0xff]  }
  0xc6   :  { %v3144_v19 = vld [vmem:[%s4126_s3 + $0x8] sm:$0xff]  }
  0xc7   :  { %1757 = vmatpush1.bf16.msra.mxu0 %v3048_v14  ;;  %1929 = vmatpush1.bf16.msra.mxu1 %v3051_v15  ;;  %v3140_v14 = vld [vmem:[%s4126_s3] sm:$0xff]  }
  0xc8   :  { %1758 = vmatprep.subr.bf16.mxu0 %v3056_v23  ;;  %1930 = vmatprep.subr.bf16.mxu1 %v3059_v24  ;;  %v3141_v15 = vld [vmem:[%s4126_s3 + $0x80] sm:$0xff]   ;;  %v3145_v23 = vld [vmem:[%s4126_s3 + $0x88] sm:$0xff]   ;;  %v3146_v24 = vld [vmem:[%s4126_s3 + $0x50] sm:$0xff]  }
  0xcb   :  { %1759 = vmatpush1.bf16.msra.mxu0 %v3054_v25  ;;  %1931 = vmatpush1.bf16.msra.mxu1 %v3057_v26  ;;  %v3147_v25 = vld [vmem:[%s4126_s3 + $0xd0] sm:$0xff]  }
  0xcc   :  { %1760 = vmatprep.subr.bf16.mxu0 %v3062_v27  ;;  %1932 = vmatprep.subr.bf16.mxu1 %v3065_v28  ;;  %v3148_v26 = vld [vmem:[%s4126_s3 + $0x10] sm:$0xff]   ;;  %v3150_v28 = vld [vmem:[%s4126_s3 + $0x58] sm:$0xff]  }
  0xcd   :  { %v3149_v27 = vld [vmem:[%s4126_s3 + $0x90] sm:$0xff]  }
  0xcf   :  { %1761 = vmatpush1.bf16.msra.mxu0 %v3060_v29  ;;  %1933 = vmatpush1.bf16.msra.mxu1 %v3063_v30  ;;  %v3151_v29 = vld [vmem:[%s4126_s3 + $0xd8] sm:$0xff]  }
  0xd0   :  { %1762 = vmatprep.subr.bf16.mxu0 %v3068_v31  ;;  %1934 = vmatprep.subr.bf16.mxu1 %v3071_v32  ;;  %v3152_v30 = vld [vmem:[%s4126_s3 + $0x18] sm:$0xff]   ;;  %v3154_v32 = vld [vmem:[%s4126_s3 + $0x60] sm:$0xff]  }
  0xd1   :  { %v3153_v31 = vld [vmem:[%s4126_s3 + $0x98] sm:$0xff]  }
  0xd3   :  { %1763 = vmatpush1.bf16.msra.mxu0 %v3066_v33  ;;  %1935 = vmatpush1.bf16.msra.mxu1 %v3069_v34  ;;  %v3155_v33 = vld [vmem:[%s4126_s3 + $0xe0] sm:$0xff]  }
  0xd4   :  { %1764 = vmatprep.subr.bf16.mxu0 %v3074_v35  ;;  %1936 = vmatprep.subr.bf16.mxu1 %v3077_v36  ;;  %v3156_v34 = vld [vmem:[%s4126_s3 + $0x20] sm:$0xff]   ;;  %v3158_v36 = vld [vmem:[%s4126_s3 + $0x68] sm:$0xff]  }
  0xd5   :  { %v3157_v35 = vld [vmem:[%s4126_s3 + $0xa0] sm:$0xff]  }
  0xd7   :  { %1765 = vmatpush1.bf16.msra.mxu0 %v3072_v37  ;;  %1937 = vmatpush1.bf16.msra.mxu1 %v3075_v38  ;;  %v3159_v37 = vld [vmem:[%s4126_s3 + $0xe8] sm:$0xff]  }
  0xd8   :  { %1766 = vmatprep.subr.bf16.mxu0 %v3080_v39  ;;  %1938 = vmatprep.subr.bf16.mxu1 %v3083_v40  ;;  %v3160_v38 = vld [vmem:[%s4126_s3 + $0x28] sm:$0xff]   ;;  %v3162_v40 = vld [vmem:[%s4126_s3 + $0x70] sm:$0xff]  }
  0xd9   :  { %v3161_v39 = vld [vmem:[%s4126_s3 + $0xa8] sm:$0xff]  }
  0xdb   :  { %1767 = vmatpush1.bf16.msra.mxu0 %v3078_v41  ;;  %1939 = vmatpush1.bf16.msra.mxu1 %v3081_v42  ;;  %v3163_v41 = vld [vmem:[%s4126_s3 + $0xf0] sm:$0xff]  }
  0xdc   :  { %1768 = vmatprep.subr.bf16.mxu0 %v3086_v43  ;;  %1940 = vmatprep.subr.bf16.mxu1 %v3089_v44  ;;  %v3164_v42 = vld [vmem:[%s4126_s3 + $0x30] sm:$0xff]   ;;  %v3166_v44 = vld [vmem:[%s4126_s3 + $0x78] sm:$0xff]  }
  0xdd   :  { %v3165_v43 = vld [vmem:[%s4126_s3 + $0xb0] sm:$0xff]  }
  0xdf   :  { %1769 = vmatpush1.bf16.msra.mxu0 %v3084_v45  ;;  %1941 = vmatpush1.bf16.msra.mxu1 %v3087_v46  ;;  %v3167_v45 = vld [vmem:[%s4126_s3 + $0xf8] sm:$0xff]  }
  0xe0   :  { %1770 = vmatprep.subr.bf16.mxu0 %v3092_v47  ;;  %1942 = vmatprep.subr.bf16.mxu1 %v3095_v48  ;;  %v3168_v46 = vld [vmem:[%s4126_s3 + $0x38] sm:$0xff]   ;;  %v1998_v48 = vlaneseq }
  0xe1   :  { %v3169_v47 = vld [vmem:[%s4126_s3 + $0xb8] sm:$0xff]  }
  0xe3   :  { %1771 = vmatpush1.bf16.msra.mxu0 %v3090_v49  ;;  %1943 = vmatpush1.bf16.msra.mxu1 %v3093_v50  ;;  %v1999_v49 = vshrl.u32 %v1998_v48, 7 }
  0xe4   :  { %1772 = vmatprep.subr.bf16.mxu0 %v3098_v51  ;;  %1944 = vmatprep.subr.bf16.mxu1 %v3101_v52  ;;  %v1996_v52 = vld [vmem:[%s4127_s2] sm:$0xf] }
  0xe5   :  { %v2000_v50 = vsub.s32 0, %v1999_v49  ;;  %v2008_v51 = vsub.s32 2, %v1999_v49 }
  0xe7   :  { %1773 = vmatpush1.bf16.msra.mxu0 %v3096_v53  ;;  %1945 = vmatpush1.bf16.msra.mxu1 %v3099_v54  ;;  %v2004_v53 = vsub.s32 1, %v1999_v49  ;;  %v2012_v54 = vsub.s32 3, %v1999_v49 }
  0xe8   :  { %1774 = vmatprep.subr.bf16.mxu0 %v3104_v55  ;;  %1946 = vmatprep.subr.bf16.mxu1 %v3107_v56  ;;  %v2001_v55 = vrot.slane %v1996_v52, %v2000_v50  ;;  %v2009_v56 = vrot.slane %v1996_v52, %v2008_v51 }
  0xeb   :  { %1775 = vmatpush1.bf16.msra.mxu0 %v3102_v57  ;;  %1947 = vmatpush1.bf16.msra.mxu1 %v3105_v58  ;;  %v2005_v57 = vrot.slane %v1996_v52, %v2004_v53  ;;  %v2013_v58 = vrot.slane %v1996_v52, %v2012_v54 }
  0xec   :  { %1776 = vmatprep.subr.bf16.mxu0 %v3110_v59  ;;  %1948 = vmatprep.subr.bf16.mxu1 %v3113_v60 }
  0xef   :  { %1777 = vmatpush1.bf16.msra.mxu0 %v3108_v61  ;;  %1949 = vmatpush1.bf16.msra.mxu1 %v3111_v62 }
  0xf0   :  { %1778 = vmatprep.subr.bf16.mxu0 %v3116_v63  ;;  %1950 = vmatprep.subr.bf16.mxu1 %v3119_v0 }
  0xf3   :  { %1779 = vmatpush1.bf16.msra.mxu0 %v3114_v1  ;;  %1951 = vmatpush1.bf16.msra.mxu1 %v3117_v2 }
  0xf4   :  { %1780 = vmatprep.subr.bf16.mxu0 %v3122_v3  ;;  %1952 = vmatprep.subr.bf16.mxu1 %v3125_v4 }
  0xf7   :  { %1781 = vmatpush1.bf16.msra.mxu0 %v3120_v5  ;;  %1953 = vmatpush1.bf16.msra.mxu1 %v3123_v6 }
  0xf8   :  { %1782 = vmatprep.subr.bf16.mxu0 %v3128_v7  ;;  %1954 = vmatprep.subr.bf16.mxu1 %v3131_v8 }
  0xfb   :  { %1783 = vmatpush1.bf16.msra.mxu0 %v3126_v9  ;;  %1955 = vmatpush1.bf16.msra.mxu1 %v3129_v10 }
  0xfc   :  { %1784 = vmatprep.subr.bf16.mxu0 %v3134_v11  ;;  %1956 = vmatprep.subr.bf16.mxu1 %v3137_v12 }
  0xff   :  { %1785 = vmatpush1.bf16.msra.mxu0 %v3132_v13  ;;  %1957 = vmatpush1.bf16.msra.mxu1 %v3135_v16 }
 0x100   :  { %2686 = vmatprep.subr.bf16.mxu0 %v3138_v18  ;;  %2708 = vmatprep.subr.bf16.mxu1 %v3139_v20 }
 0x102   :  { %1787 = vmatmul.mubr.bf16.vlgmr.msra.gmra.mrb[0].mxu0 %v2395_v21  ;;  %1959 = vmatmul.mubr.bf16.vlgmr.msra.gmra.mrb[0].mxu1 %v2395_v21 }
 0x103   :  { %2687 = vmatpush3.bf16.msra.mxu0 %v3140_v14  ;;  %2709 = vmatpush3.bf16.msra.mxu1 %v3141_v15 }
 0x104   :  { %2688 = vmatprep.subr.bf16.mxu0 %v3142_v22  ;;  %2710 = vmatprep.subr.bf16.mxu1 %v3143_v17 }
 0x107   :  { %2689 = vmatpush3.bf16.msra.mxu0 %v3144_v19  ;;  %2711 = vmatpush3.bf16.msra.mxu1 %v3145_v23 }
 0x108   :  { %2690 = vmatprep.subr.bf16.mxu0 %v3146_v24  ;;  %2712 = vmatprep.subr.bf16.mxu1 %v3147_v25  ;;  %v2653_v25 = vld [vmem:[%s4128_s4] ss:$0 sm:$0xff] }
 0x10b   :  { %2691 = vmatpush3.bf16.msra.mxu0 %v3148_v26  ;;  %2713 = vmatpush3.bf16.msra.mxu1 %v3149_v27 }
 0x10c   :  { %2692 = vmatprep.subr.bf16.mxu0 %v3150_v28  ;;  %2714 = vmatprep.subr.bf16.mxu1 %v3151_v29 }
 0x10f   :  { %2693 = vmatpush3.bf16.msra.mxu0 %v3152_v30  ;;  %2715 = vmatpush3.bf16.msra.mxu1 %v3153_v31 }
 0x110   :  { %2694 = vmatprep.subr.bf16.mxu0 %v3154_v32  ;;  %2716 = vmatprep.subr.bf16.mxu1 %v3155_v33 }
 0x113   :  { %2695 = vmatpush3.bf16.msra.mxu0 %v3156_v34  ;;  %2717 = vmatpush3.bf16.msra.mxu1 %v3157_v35 }
 0x114   :  { %2696 = vmatprep.subr.bf16.mxu0 %v3158_v36  ;;  %2718 = vmatprep.subr.bf16.mxu1 %v3159_v37 }
 0x117   :  { %2697 = vmatpush3.bf16.msra.mxu0 %v3160_v38  ;;  %2719 = vmatpush3.bf16.msra.mxu1 %v3161_v39 }
 0x118   :  { %2698 = vmatprep.subr.bf16.mxu0 %v3162_v40  ;;  %2720 = vmatprep.subr.bf16.mxu1 %v3163_v41 }
 0x11b   :  { %2699 = vmatpush3.bf16.msra.mxu0 %v3164_v42  ;;  %2721 = vmatpush3.bf16.msra.mxu1 %v3165_v43 }
 0x11c   :  { %2700 = vmatprep.subr.bf16.mxu0 %v3166_v44  ;;  %2722 = vmatprep.subr.bf16.mxu1 %v3167_v45 }
 0x11f   :  { %2701 = vmatpush3.bf16.msra.mxu0 %v3168_v46  ;;  %2723 = vmatpush3.bf16.msra.mxu1 %v3169_v47 }
 0x1d5   :  { %v1788_v59 = vpop.f32.mrb[0].mxu0  ;;  %v1960_v60 = vpop.f32.mrb[0].mxu1 }
 0x1d6   :  { %v2018_v61 = vadd.f32 %v2001_v55, %v1788_v59  ;;  %v2020_v62 = vadd.f32 %v2009_v56, %v1960_v60  ;;  %v1790_v63 = vpop.f32.mrb[1].mxu0  ;;  %v1962_v0 = vpop.f32.mrb[1].mxu1 }
 0x1d7   :  { %v2019_v1 = vadd.f32 %v2005_v57, %v1790_v63  ;;  %v2021_v2 = vadd.f32 %v2013_v58, %v1962_v0  ;;  %v1792_v3 = vpop.f32.mrb[2].mxu0  ;;  %v1964_v4 = vpop.f32.mrb[2].mxu1 }
 0x1d8   :  { %v2022_v5 = vadd.f32 %v2001_v55, %v1792_v3  ;;  %v2024_v6 = vadd.f32 %v2009_v56, %v1964_v4  ;;  %v1794_v7 = vpop.f32.mrb[3].mxu0  ;;  %v1966_v8 = vpop.f32.mrb[3].mxu1  ;;  %v2026_v11 = vmax.f32 %v2018_v61, 0.0  ;;  %v2028_v12 = vmax.f32 %v2020_v62, 0.0 }
 0x1d9   :  { %v2023_v9 = vadd.f32 %v2005_v57, %v1794_v7  ;;  %v2025_v10 = vadd.f32 %v2013_v58, %v1966_v8  ;;  %v2027_v18 = vmax.f32 %v2019_v1, 0.0  ;;  %v2029_v20 = vmax.f32 %v2021_v2, 0.0 }
 0x1da   :  { %v2030_v13 = vmax.f32 %v2022_v5, 0.0  ;;  %v2032_v16 = vmax.f32 %v2024_v6, 0.0 }
 0x1db   :  { %v2031_v21 = vmax.f32 %v2023_v9, 0.0  ;;  %v2033_v14 = vmax.f32 %v2025_v10, 0.0 }
 0x1dc   :  { %v2034_v15 = vpack.c.bf16 %v2030_v13, %v2026_v11  ;;  %v2036_v22 = vpack.c.bf16 %v2032_v16, %v2028_v12 }
 0x1dd   :  { %v2035_v17 = vpack.c.bf16 %v2031_v21, %v2027_v18  ;;  %v2037_v19 = vpack.c.bf16 %v2033_v14, %v2029_v20 }
 0x1df   :  { %2333 = vmatprep.mubr.bf16.mxu0 %v2035_v17  ;;  %2374 = vmatprep.mubr.bf16.mxu1 %v2037_v19 }
 0x1e0   :  { %2334 = vmatmul.mubr.bf16.vlgmr.msra.gmra.mrb[4].mxu0 %v2034_v15  ;;  %2375 = vmatmul.mubr.bf16.vlgmr.msra.gmra.mrb[4].mxu1 %v2036_v22 }
 0x2b3   :  { %v2702_v23 = vpop.f32.mrb[4].mxu0  ;;  %v2724_v24 = vpop.f32.mrb[4].mxu1 }
 0x2b4   :  { %v2703_v26 = vpop.f32.mrb[5].mxu0  ;;  %v2725_v27 = vpop.f32.mrb[5].mxu1 }
 0x2b5   :  { %v2704_v28 = vadd.f32 %v2703_v26, %v2702_v23  ;;  %v2726_v29 = vadd.f32 %v2725_v27, %v2724_v24  ;;  %v2705_v30 = vpop.f32.mrb[6].mxu0  ;;  %v2727_v31 = vpop.f32.mrb[6].mxu1 }
 0x2b6   :  { %v2706_v32 = vpop.f32.mrb[7].mxu0  ;;  %v2728_v33 = vpop.f32.mrb[7].mxu1 }
 0x2b7   :  { %v2336_v34 = vadd.f32 %v2704_v28, %v2653_v25  ;;  %v2707_v35 = vadd.f32 %v2706_v32, %v2705_v30  ;;  %v2729_v36 = vadd.f32 %v2728_v33, %v2727_v31 }
 0x2b9   :  { %v2377_v37 = vadd.f32 %v2726_v29, %v2336_v34  ;;  %v2339_v38 = vadd.f32 %v2707_v35, %v2653_v25 }
 0x2bb   :  { %2383 = vst [vmem:[%s4129_s5] sm:$0xff] %v2377_v37  ;;  %v2380_v39 = vadd.f32 %v2729_v36, %v2339_v38 }
 0x2bd   :  { %2384 = vst [vmem:[%s4129_s5 + $0x8] sm:$0xff] %v2380_v39 }

</bundles_post_ra>
